<compile_context>
chip_gen: v5e
topology: v5e:2x2
jax: 0.10.0
libtpu: 0.0.40
codegen_flags: <defaults>
</compile_context>

<pallas_src>
import math

import jax
import jax.numpy as jnp
from jax.experimental import pallas as pl
from jax.experimental.pallas import tpu as pltpu

NUM_CLASS = 10

# Padded (lane-friendly) layer widths: D0..D3 are fc1..fc4 input dims, D4 the output dim.
_PAD_DIMS = (512, 256, 128, 128, 128)


def _round_up(n, m):
    return ((n + m - 1) // m) * m


def _cdiv(a, b):
    return -(-a // b)


def _mlp_kernel(x_ref,
                w1_ref, b1_ref,
                w2_ref, b2_ref,
                w3_ref, b3_ref,
                w4_ref, b4_ref,
                o_ref):
    """Fused fc1..fc4 + ReLU over one (TB, D0) bf16 batch tile.

    x and weights are bf16 (MXU-native on v6e/v7x); the MXU accumulates in f32 and all
    VPU work (bias add, ReLU) stays f32 (no bf16 elementwise on v5e).  Output stored bf16.
    """
    def layer(h_bf16, w_ref, b_ref):
        acc = jnp.dot(h_bf16, w_ref[...], preferred_element_type=jnp.float32)
        return jnp.maximum(acc + b_ref[...], 0.0)

    # TODO(synk): dropout1/2/3 (p=0.2) are identity at inference; not materialized.
    h = layer(x_ref[...], w1_ref, b1_ref)                    # x already bf16: no cast
    h = layer(h.astype(jnp.bfloat16), w2_ref, b2_ref)
    h = layer(h.astype(jnp.bfloat16), w3_ref, b3_ref)
    h = layer(h.astype(jnp.bfloat16), w4_ref, b4_ref)        # ReLU after fc4 matches Net.forward
    o_ref[...] = h.astype(o_ref.dtype)                       # lane-dense bf16 store


def mlp_forward(x, params, *, num_class=NUM_CLASS, target_tb=1024):
    """x: (B, 450) float32 (or bf16); params: padded/prepared params (see prepare_params)."""
    B, F = x.shape
    D0, D1, D2, D3, D4 = _PAD_DIMS

    # Batch tiling: aim for ~target_tb rows per tile on large batches (amortize per-step
    # overhead), but keep >= 2 grid steps once B >= 16 so v7x's two TensorCores both get
    # a share of the "parallel" batch axis.  TB is a multiple of 8 (sublane alignment),
    # and sizing it from B keeps dead padded rows to < one sublane group per tile.
    n_tiles = max(1, _cdiv(B, target_tb))
    if B >= 16:
        n_tiles = max(n_tiles, 2)
    TB = _round_up(_cdiv(B, n_tiles), 8)
    Bp = _round_up(B, TB)
    grid = (Bp // TB,)

    # Single bf16 pad+cast materialization (features 450 -> D0, batch B -> Bp).  Padded
    # rows/cols are explicit zeros (never rely on OOB reads) and are sliced off at the end.
    xb = x.astype(jnp.bfloat16)
    if Bp == B and F == D0:
        xp = xb
    else:
        xp = jnp.zeros((Bp, D0), jnp.bfloat16).at[:B, :F].set(xb)

    def batch_tile(shape):
        return pl.BlockSpec(shape, lambda i: (i, 0))

    def resident(shape):
        # Constant index_map: block never changes -> weights/biases stay VMEM-resident.
        return pl.BlockSpec(shape, lambda i: (0, 0))

    out = pl.pallas_call(
        _mlp_kernel,
        out_shape=jax.ShapeDtypeStruct((Bp, D4), jnp.bfloat16),
        grid=grid,
        in_specs=[
            batch_tile((TB, D0)),
            resident((D0, D1)), resident((1, D1)),
            resident((D1, D2)), resident((1, D2)),
            resident((D2, D3)), resident((1, D3)),
            resident((D3, D4)), resident((1, D4)),
        ],
        out_specs=batch_tile((TB, D4)),
        compiler_params=pltpu.CompilerParams(
            dimension_semantics=("parallel",),      # batch axis -> megacore on v7x
            vmem_limit_bytes=32 * 1024 * 1024,
        ),
    )(
        xp,
        params["w1"], params["b1"],
        params["w2"], params["b2"],
        params["w3"], params["b3"],
        params["w4"], params["b4"],
    )
    return out[:B, :num_class].astype(jnp.float32)


def init_params(key, num_class=NUM_CLASS):
    """Deterministic init mimicking nn.Linear's default uniform(-1/sqrt(fan_in), ...)."""
    sizes = [(450, 200), (200, 75), (75, 30), (30, num_class)]
    params = {}
    keys = jax.random.split(key, 2 * len(sizes))
    for i, (fin, fout) in enumerate(sizes):
        bound = 1.0 / math.sqrt(fin)
        params[f"w{i + 1}"] = jax.random.uniform(
            keys[2 * i], (fin, fout), jnp.float32, -bound, bound)
        params[f"b{i + 1}"] = jax.random.uniform(
            keys[2 * i + 1], (1, fout), jnp.float32, -bound, bound)
    return params


def prepare_params(raw, num_class=NUM_CLASS):
    """Zero-pad layer widths to MXU-friendly sizes; weights -> bf16, biases stay f32."""
    in_dims = (450, 200, 75, 30)
    out_dims = (200, 75, 30, num_class)
    pad_in = _PAD_DIMS[:4]
    pad_out = _PAD_DIMS[1:]
    prepped = {}
    for i in range(4):
        w = raw[f"w{i + 1}"]
        b = raw[f"b{i + 1}"]
        wp = jnp.zeros((pad_in[i], pad_out[i]), jnp.float32)
        wp = wp.at[:in_dims[i], :out_dims[i]].set(w)
        bp = jnp.zeros((1, pad_out[i]), jnp.float32).at[:, :out_dims[i]].set(b)
        prepped[f"w{i + 1}"] = wp.astype(jnp.bfloat16)
        prepped[f"b{i + 1}"] = bp
    return prepped


def reference_forward(x, prepped, num_class=NUM_CLASS):
    """Pure-JAX reference mirroring the kernel's bf16-in / f32-accumulate / bf16-out math."""
    D0 = _PAD_DIMS[0]
    h = jnp.zeros((x.shape[0], D0), jnp.float32).at[:, :x.shape[1]].set(x)
    for i in range(1, 5):
        acc = jnp.dot(h.astype(jnp.bfloat16), prepped[f"w{i}"],
                      preferred_element_type=jnp.float32)
        h = jnp.maximum(acc + prepped[f"b{i}"], 0.0)
    return h.astype(jnp.bfloat16).astype(jnp.float32)[:, :num_class]


if __name__ == "__main__":
    key = jax.random.PRNGKey(0)
    pkey, xkey = jax.random.split(key)

    raw = init_params(pkey, NUM_CLASS)
    params = prepare_params(raw, NUM_CLASS)

    # Ragged batch (not a multiple of 8 or of the tile) to exercise batch-adaptive tiling:
    # B=300 -> n_tiles=2, TB=152, Bp=304, grid=(2,)  (only 4 dead padded rows).
    B = 300
    x = jax.random.normal(xkey, (B, 450), jnp.float32)

    fwd = jax.jit(lambda xx: mlp_forward(xx, params, num_class=NUM_CLASS))
    out = jax.block_until_ready(fwd(x))
    ref = reference_forward(x, params, NUM_CLASS)

    assert out.shape == (B, NUM_CLASS), out.shape
    max_err = float(jnp.max(jnp.abs(out - ref)))
    assert jnp.allclose(out, ref, atol=5e-3, rtol=5e-3), f"mismatch vs reference: {max_err}"

    print("KERNEL_OK")
</pallas_src>

<mosaic_0001>
module attributes {stable_mosaic.version = 11 : i64} {
  func.func @_mlp_kernel(%arg0: i32, %arg1: memref<152x512xbf16, #tpu.memory_space<vmem>>, %arg2: memref<512x256xbf16, #tpu.memory_space<vmem>>, %arg3: memref<1x256xf32, #tpu.memory_space<vmem>>, %arg4: memref<256x128xbf16, #tpu.memory_space<vmem>>, %arg5: memref<1x128xf32, #tpu.memory_space<vmem>>, %arg6: memref<128x128xbf16, #tpu.memory_space<vmem>>, %arg7: memref<1x128xf32, #tpu.memory_space<vmem>>, %arg8: memref<128x128xbf16, #tpu.memory_space<vmem>>, %arg9: memref<1x128xf32, #tpu.memory_space<vmem>>, %arg10: memref<152x128xbf16, #tpu.memory_space<vmem>>) attributes {dimension_semantics = [#tpu.dimension_semantics<parallel>], iteration_bounds = array<i64: 2>, scalar_prefetch = 0 : i64, scratch_operands = 0 : i64, tpu.core_type = #tpu.core_type<tc>, window_params = [{transform_indices = @transform_0, window_bounds = array<i64: 152, 512>}, {pipeline_mode = #tpu.pipeline_mode<synchronous>, transform_indices = @transform_1, window_bounds = array<i64: 512, 256>}, {pipeline_mode = #tpu.pipeline_mode<synchronous>, transform_indices = @transform_2, window_bounds = array<i64: 1, 256>}, {pipeline_mode = #tpu.pipeline_mode<synchronous>, transform_indices = @transform_3, window_bounds = array<i64: 256, 128>}, {pipeline_mode = #tpu.pipeline_mode<synchronous>, transform_indices = @transform_4, window_bounds = array<i64: 1, 128>}, {pipeline_mode = #tpu.pipeline_mode<synchronous>, transform_indices = @transform_5, window_bounds = array<i64: 128, 128>}, {pipeline_mode = #tpu.pipeline_mode<synchronous>, transform_indices = @transform_6, window_bounds = array<i64: 1, 128>}, {pipeline_mode = #tpu.pipeline_mode<synchronous>, transform_indices = @transform_7, window_bounds = array<i64: 128, 128>}, {pipeline_mode = #tpu.pipeline_mode<synchronous>, transform_indices = @transform_8, window_bounds = array<i64: 1, 128>}, {transform_indices = @transform_9, window_bounds = array<i64: 152, 128>}]} {
    %c0 = arith.constant 0 : index
    %c0_0 = arith.constant 0 : index
    %0 = vector.load %arg1[%c0, %c0_0] : memref<152x512xbf16, #tpu.memory_space<vmem>>, vector<152x512xbf16>
    %c0_1 = arith.constant 0 : index
    %c0_2 = arith.constant 0 : index
    %1 = vector.load %arg2[%c0_1, %c0_2] : memref<512x256xbf16, #tpu.memory_space<vmem>>, vector<512x256xbf16>
    %cst = arith.constant dense<0.000000e+00> : vector<152x256xf32>
    %2 = tpu.matmul %0, %1, %cst {dimension_numbers = #tpu.dot_dimension_numbers<[1], [0], [0], [1], [0, 0, 1, 1], [], []>} : vector<152x512xbf16>, vector<512x256xbf16>, vector<152x256xf32> -> vector<152x256xf32>
    %c0_3 = arith.constant 0 : index
    %c0_4 = arith.constant 0 : index
    %3 = vector.load %arg3[%c0_3, %c0_4] : memref<1x256xf32, #tpu.memory_space<vmem>>, vector<1x256xf32>
    %4 = vector.broadcast %3 : vector<1x256xf32> to vector<152x256xf32>
    %5 = arith.addf %2, %4 : vector<152x256xf32>
    %cst_5 = arith.constant 0.000000e+00 : f32
    %6 = vector.broadcast %cst_5 : f32 to vector<152x256xf32>
    %7 = arith.maximumf %5, %6 : vector<152x256xf32>
    %8 = arith.truncf %7 : vector<152x256xf32> to vector<152x256xbf16>
    %c0_6 = arith.constant 0 : index
    %c0_7 = arith.constant 0 : index
    %9 = vector.load %arg4[%c0_6, %c0_7] : memref<256x128xbf16, #tpu.memory_space<vmem>>, vector<256x128xbf16>
    %cst_8 = arith.constant dense<0.000000e+00> : vector<152x128xf32>
    %10 = tpu.matmul %8, %9, %cst_8 {dimension_numbers = #tpu.dot_dimension_numbers<[1], [0], [0], [1], [0, 0, 1, 1], [], []>} : vector<152x256xbf16>, vector<256x128xbf16>, vector<152x128xf32> -> vector<152x128xf32>
    %c0_9 = arith.constant 0 : index
    %c0_10 = arith.constant 0 : index
    %11 = vector.load %arg5[%c0_9, %c0_10] : memref<1x128xf32, #tpu.memory_space<vmem>>, vector<1x128xf32>
    %12 = vector.broadcast %11 : vector<1x128xf32> to vector<152x128xf32>
    %13 = arith.addf %10, %12 : vector<152x128xf32>
    %cst_11 = arith.constant 0.000000e+00 : f32
    %14 = vector.broadcast %cst_11 : f32 to vector<152x128xf32>
    %15 = arith.maximumf %13, %14 : vector<152x128xf32>
    %16 = arith.truncf %15 : vector<152x128xf32> to vector<152x128xbf16>
    %c0_12 = arith.constant 0 : index
    %c0_13 = arith.constant 0 : index
    %17 = vector.load %arg6[%c0_12, %c0_13] : memref<128x128xbf16, #tpu.memory_space<vmem>>, vector<128x128xbf16>
    %cst_14 = arith.constant dense<0.000000e+00> : vector<152x128xf32>
    %18 = tpu.matmul %16, %17, %cst_14 {dimension_numbers = #tpu.dot_dimension_numbers<[1], [0], [0], [1], [0, 0, 1, 1], [], []>} : vector<152x128xbf16>, vector<128x128xbf16>, vector<152x128xf32> -> vector<152x128xf32>
    %c0_15 = arith.constant 0 : index
    %c0_16 = arith.constant 0 : index
    %19 = vector.load %arg7[%c0_15, %c0_16] : memref<1x128xf32, #tpu.memory_space<vmem>>, vector<1x128xf32>
    %20 = vector.broadcast %19 : vector<1x128xf32> to vector<152x128xf32>
    %21 = arith.addf %18, %20 : vector<152x128xf32>
    %cst_17 = arith.constant 0.000000e+00 : f32
    %22 = vector.broadcast %cst_17 : f32 to vector<152x128xf32>
    %23 = arith.maximumf %21, %22 : vector<152x128xf32>
    %24 = arith.truncf %23 : vector<152x128xf32> to vector<152x128xbf16>
    %c0_18 = arith.constant 0 : index
    %c0_19 = arith.constant 0 : index
    %25 = vector.load %arg8[%c0_18, %c0_19] : memref<128x128xbf16, #tpu.memory_space<vmem>>, vector<128x128xbf16>
    %cst_20 = arith.constant dense<0.000000e+00> : vector<152x128xf32>
    %26 = tpu.matmul %24, %25, %cst_20 {dimension_numbers = #tpu.dot_dimension_numbers<[1], [0], [0], [1], [0, 0, 1, 1], [], []>} : vector<152x128xbf16>, vector<128x128xbf16>, vector<152x128xf32> -> vector<152x128xf32>
    %c0_21 = arith.constant 0 : index
    %c0_22 = arith.constant 0 : index
    %27 = vector.load %arg9[%c0_21, %c0_22] : memref<1x128xf32, #tpu.memory_space<vmem>>, vector<1x128xf32>
    %28 = vector.broadcast %27 : vector<1x128xf32> to vector<152x128xf32>
    %29 = arith.addf %26, %28 : vector<152x128xf32>
    %cst_23 = arith.constant 0.000000e+00 : f32
    %30 = vector.broadcast %cst_23 : f32 to vector<152x128xf32>
    %31 = arith.maximumf %29, %30 : vector<152x128xf32>
    %32 = arith.truncf %31 : vector<152x128xf32> to vector<152x128xbf16>
    %c0_24 = arith.constant 0 : index
    %c0_25 = arith.constant 0 : index
    %33 = vector.load %arg10[%c0_24, %c0_25] : memref<152x128xbf16, #tpu.memory_space<vmem>>, vector<152x128xbf16>
    tpu.vector_store %arg10[%c0_24, %c0_25], %32 {strides = array<i32>} : memref<152x128xbf16, #tpu.memory_space<vmem>>, vector<152x128xbf16>,
    return
  }
  func.func @transform_0(%arg0: i32) -> (i32, i32) {
    %c0_i32 = arith.constant 0 : i32
    %c0_i32_0 = arith.constant 0 : i32
    return %arg0, %c0_i32 : i32, i32
  }
  func.func @transform_1(%arg0: i32) -> (i32, i32) {
    %c0_i32 = arith.constant 0 : i32
    %c0_i32_0 = arith.constant 0 : i32
    %c0_i32_1 = arith.constant 0 : i32
    return %c0_i32, %c0_i32_0 : i32, i32
  }
  func.func @transform_2(%arg0: i32) -> (i32, i32) {
    %c0_i32 = arith.constant 0 : i32
    %c0_i32_0 = arith.constant 0 : i32
    %c0_i32_1 = arith.constant 0 : i32
    return %c0_i32, %c0_i32_0 : i32, i32
  }
  func.func @transform_3(%arg0: i32) -> (i32, i32) {
    %c0_i32 = arith.constant 0 : i32
    %c0_i32_0 = arith.constant 0 : i32
    %c0_i32_1 = arith.constant 0 : i32
    return %c0_i32, %c0_i32_0 : i32, i32
  }
  func.func @transform_4(%arg0: i32) -> (i32, i32) {
    %c0_i32 = arith.constant 0 : i32
    %c0_i32_0 = arith.constant 0 : i32
    %c0_i32_1 = arith.constant 0 : i32
    return %c0_i32, %c0_i32_0 : i32, i32
  }
  func.func @transform_5(%arg0: i32) -> (i32, i32) {
    %c0_i32 = arith.constant 0 : i32
    %c0_i32_0 = arith.constant 0 : i32
    %c0_i32_1 = arith.constant 0 : i32
    return %c0_i32, %c0_i32_0 : i32, i32
  }
  func.func @transform_6(%arg0: i32) -> (i32, i32) {
    %c0_i32 = arith.constant 0 : i32
    %c0_i32_0 = arith.constant 0 : i32
    %c0_i32_1 = arith.constant 0 : i32
    return %c0_i32, %c0_i32_0 : i32, i32
  }
  func.func @transform_7(%arg0: i32) -> (i32, i32) {
    %c0_i32 = arith.constant 0 : i32
    %c0_i32_0 = arith.constant 0 : i32
    %c0_i32_1 = arith.constant 0 : i32
    return %c0_i32, %c0_i32_0 : i32, i32
  }
  func.func @transform_8(%arg0: i32) -> (i32, i32) {
    %c0_i32 = arith.constant 0 : i32
    %c0_i32_0 = arith.constant 0 : i32
    %c0_i32_1 = arith.constant 0 : i32
    return %c0_i32, %c0_i32_0 : i32, i32
  }
  func.func @transform_9(%arg0: i32) -> (i32, i32) {
    %c0_i32 = arith.constant 0 : i32
    %c0_i32_0 = arith.constant 0 : i32
    return %arg0, %c0_i32 : i32, i32
  }
}

</mosaic_0001>

<bundles_post_ra>
// kernel: _lambda_.1
= control target key start
LH: loop header
LB: loop body
LE: loop exit
PB: predicated region body
PF: predicated region fallthrough
CT: control target
= control target key end

     0   :  { %s2947_s30 = smov 0   ;;  %s3849_s0 = inlined_call_operand.vmem [shape: bf16[304,512], index: 0, kind: input, shape index: {}]   ;;  %s3850_s1 = inlined_call_operand.vmem [shape: bf16[512,256], index: 1, kind: input, shape index: {}]   ;;  %s3851_s2 = inlined_call_operand.vmem [shape: f32[1,256], index: 2, kind: input, shape index: {}]   ;;  %s3852_s3 = inlined_call_operand.vmem [shape: bf16[256,128], index: 3, kind: input, shape index: {}]   ;;  %s3853_s4 = inlined_call_operand.vmem [shape: f32[1,128], index: 4, kind: input, shape index: {}]   ;;  %s3854_s5 = inlined_call_operand.vmem [shape: bf16[128,128], index: 5, kind: input, shape index: {}]   ;;  %s3855_s6 = inlined_call_operand.vmem [shape: f32[1,128], index: 6, kind: input, shape index: {}]   ;;  %s3856_s7 = inlined_call_operand.vmem [shape: bf16[128,128], index: 7, kind: input, shape index: {}]   ;;  %s3857_s8 = inlined_call_operand.vmem [shape: f32[1,128], index: 8, kind: input, shape index: {}]   ;;  %s3858_s9 = inlined_call_operand.vmem [shape: bf16[304,128], index: 9, kind: output, shape index: {}]  }
   0x1 LB: > { %s2154_s10 = sadd.s32 4294967295, %s2895_s30   ;;  %p2158_p0 = scmp.ge.s32.totalorder %s2895_s30, 1  ;;  %s2895_s30 = sphi %s2947_s30, %s19_s30  }
   0x2   : > { %p289_p1 = scmp.lt.s32.totalorder %s2895_s30, 3 }
   0x4   : > { %p290_p2 = pnand %p2158_p0, %p289_p1 }
   0x5   : > { %s326_s26 = smul.u32 (!%p290_p2), 19, %s2154_s10 }
   0x6   : > { %293 = sbr.rel (%p290_p2) target bundleno = 937 (0x3a9), region = 56 }
   0x7   : > { %p327_p3 = scmp.lt.s32.totalorder (!%p290_p2), %s326_s26, 37 }
   0xb   : > { %v2364_v0 = vld [vmem:[%s3850_s1 + $0x70] sm:$0xf]  ;;  %v2744_v1 = vld [vmem:[%s3850_s1 + $0x74] sm:$0xf0]  ;;  %v2356_v11 = vld [vmem:[%s3850_s1 + $0x60] sm:$0xf] }
   0xc   : > { %v2428_v2 = vld [vmem:[%s3850_s1 + $0xf0] sm:$0xf]  ;;  %v2365_v3 = vor.u32 %v2744_v1, %v2364_v0  ;;  %v2760_v4 = vld [vmem:[%s3850_s1 + $0xf4] sm:$0xf0]  ;;  %v2742_v13 = vld [vmem:[%s3850_s1 + $0x64] sm:$0xf0] }
   0xd   : > { %v2492_v5 = vld [vmem:[%s3850_s1 + $0x170] sm:$0xf]  ;;  %v2776_v6 = vld [vmem:[%s3850_s1 + $0x174] sm:$0xf0]  ;;  %v2429_v7 = vor.u32 %v2760_v4, %v2428_v2  ;;  %v2420_v14 = vld [vmem:[%s3850_s1 + $0xe0] sm:$0xf]  ;;  %v2357_v16 = vor.u32 %v2742_v13, %v2356_v11 }
   0xe   : > { %v2493_v8 = vor.u32 %v2776_v6, %v2492_v5  ;;  %v2556_v9 = vld [vmem:[%s3850_s1 + $0x1f0] sm:$0xf]  ;;  %v2792_v10 = vld [vmem:[%s3850_s1 + $0x1f4] sm:$0xf0]  ;;  %961 = vmatpush.bf16.msra.mxu0 %v2365_v3  ;;  %v2758_v15 = vld [vmem:[%s3850_s1 + $0xe4] sm:$0xf0] }
   0xf   : > { %v2557_v12 = vor.u32 %v2792_v10, %v2556_v9  ;;  %1019 = vmatpush.bf16.msra.mxu1 %v2429_v7  ;;  %v2421_v17 = vor.u32 %v2758_v15, %v2420_v14  ;;  %v2484_v18 = vld [vmem:[%s3850_s1 + $0x160] sm:$0xf]  ;;  %v2774_v19 = vld [vmem:[%s3850_s1 + $0x164] sm:$0xf0]  ;;  %v2348_v23 = vld [vmem:[%s3850_s1 + $0x50] sm:$0xf] }
  0x10   : > { %1077 = vmatpush.bf16.msra.mxu2 %v2493_v8  ;;  %v2548_v20 = vld [vmem:[%s3850_s1 + $0x1e0] sm:$0xf]  ;;  %v2485_v21 = vor.u32 %v2774_v19, %v2484_v18  ;;  %v2790_v22 = vld [vmem:[%s3850_s1 + $0x1e4] sm:$0xf0]  ;;  %v2740_v24 = vld [vmem:[%s3850_s1 + $0x54] sm:$0xf0] }
  0x11   : > { %1135 = vmatpush.bf16.msra.mxu3 %v2557_v12  ;;  %v2549_v25 = vor.u32 %v2790_v22, %v2548_v20  ;;  %v2412_v26 = vld [vmem:[%s3850_s1 + $0xd0] sm:$0xf]  ;;  %v2756_v27 = vld [vmem:[%s3850_s1 + $0xd4] sm:$0xf0]  ;;  %v2349_v29 = vor.u32 %v2740_v24, %v2348_v23  ;;  %v2340_v35 = vld [vmem:[%s3850_s1 + $0x40] sm:$0xf] }
  0x12   : > { %v2476_v28 = vld [vmem:[%s3850_s1 + $0x150] sm:$0xf]  ;;  %962 = vmatpush.bf16.msra.mxu0 %v2357_v16  ;;  %v2772_v30 = vld [vmem:[%s3850_s1 + $0x154] sm:$0xf0]  ;;  %v2413_v33 = vor.u32 %v2756_v27, %v2412_v26  ;;  %v2738_v36 = vld [vmem:[%s3850_s1 + $0x44] sm:$0xf0] }
  0x13   : > { %v2540_v31 = vld [vmem:[%s3850_s1 + $0x1d0] sm:$0xf]  ;;  %v2788_v32 = vld [vmem:[%s3850_s1 + $0x1d4] sm:$0xf0]  ;;  %1020 = vmatpush.bf16.msra.mxu1 %v2421_v17  ;;  %v2477_v34 = vor.u32 %v2772_v30, %v2476_v28  ;;  %v2404_v37 = vld [vmem:[%s3850_s1 + $0xc0] sm:$0xf]  ;;  %v2341_v44 = vor.u32 %v2738_v36, %v2340_v35 }
  0x14   : > { %1078 = vmatpush.bf16.msra.mxu2 %v2485_v21  ;;  %v2541_v38 = vor.u32 %v2788_v32, %v2540_v31  ;;  %v2754_v39 = vld [vmem:[%s3850_s1 + $0xc4] sm:$0xf0]  ;;  %v2468_v40 = vld [vmem:[%s3850_s1 + $0x140] sm:$0xf]  ;;  %v2332_v47 = vld [vmem:[%s3850_s1 + $0x30] sm:$0xf] }
  0x15   : > { %1136 = vmatpush.bf16.msra.mxu3 %v2549_v25  ;;  %v2770_v41 = vld [vmem:[%s3850_s1 + $0x144] sm:$0xf0]  ;;  %v2532_v42 = vld [vmem:[%s3850_s1 + $0x1c0] sm:$0xf]  ;;  %v2405_v45 = vor.u32 %v2754_v39, %v2404_v37  ;;  %v2736_v48 = vld [vmem:[%s3850_s1 + $0x34] sm:$0xf0] }
  0x16   : > { %v2786_v43 = vld [vmem:[%s3850_s1 + $0x1c4] sm:$0xf0]  ;;  %963 = vmatpush.bf16.msra.mxu0 %v2349_v29  ;;  %v2469_v46 = vor.u32 %v2770_v41, %v2468_v40  ;;  %v2396_v49 = vld [vmem:[%s3850_s1 + $0xb0] sm:$0xf]  ;;  %v2752_v51 = vld [vmem:[%s3850_s1 + $0xb4] sm:$0xf0]  ;;  %v2333_v56 = vor.u32 %v2736_v48, %v2332_v47 }
  0x17   : > { %1021 = vmatpush.bf16.msra.mxu1 %v2413_v33  ;;  %v2533_v50 = vor.u32 %v2786_v43, %v2532_v42  ;;  %v2460_v52 = vld [vmem:[%s3850_s1 + $0x130] sm:$0xf]  ;;  %v2768_v53 = vld [vmem:[%s3850_s1 + $0x134] sm:$0xf0]  ;;  %v2397_v57 = vor.u32 %v2752_v51, %v2396_v49  ;;  %v2324_v59 = vld [vmem:[%s3850_s1 + $0x20] sm:$0xf] }
  0x18   : > { %1079 = vmatpush.bf16.msra.mxu2 %v2477_v34  ;;  %v2524_v54 = vld [vmem:[%s3850_s1 + $0x1b0] sm:$0xf]  ;;  %v2784_v55 = vld [vmem:[%s3850_s1 + $0x1b4] sm:$0xf0]  ;;  %v2461_v58 = vor.u32 %v2768_v53, %v2460_v52  ;;  %v2734_v60 = vld [vmem:[%s3850_s1 + $0x24] sm:$0xf0] }
  0x19   : > { %1137 = vmatpush.bf16.msra.mxu3 %v2541_v38  ;;  %v2388_v61 = vld [vmem:[%s3850_s1 + $0xa0] sm:$0xf]  ;;  %v2525_v62 = vor.u32 %v2784_v55, %v2524_v54  ;;  %v2750_v63 = vld [vmem:[%s3850_s1 + $0xa4] sm:$0xf0]  ;;  %v2325_v4 = vor.u32 %v2734_v60, %v2324_v59  ;;  %v2316_v5 = vld [vmem:[%s3850_s1 + $0x10] sm:$0xf] }
  0x1a   : > { %964 = vmatpush.bf16.msra.mxu0 %v2341_v44  ;;  %v2452_v0 = vld [vmem:[%s3850_s1 + $0x120] sm:$0xf]  ;;  %v2766_v1 = vld [vmem:[%s3850_s1 + $0x124] sm:$0xf0]  ;;  %v2732_v6 = vld [vmem:[%s3850_s1 + $0x14] sm:$0xf0]  ;;  %v2389_v7 = vor.u32 %v2750_v63, %v2388_v61 }
  0x1b   : > { %1022 = vmatpush.bf16.msra.mxu1 %v2405_v45  ;;  %v2516_v2 = vld [vmem:[%s3850_s1 + $0x1a0] sm:$0xf]  ;;  %v2782_v3 = vld [vmem:[%s3850_s1 + $0x1a4] sm:$0xf0]  ;;  %v2453_v8 = vor.u32 %v2766_v1, %v2452_v0  ;;  %v2380_v9 = vld [vmem:[%s3850_s1 + $0x90] sm:$0xf]  ;;  %v2317_v18 = vor.u32 %v2732_v6, %v2316_v5 }
  0x1c   : > { %1080 = vmatpush.bf16.msra.mxu2 %v2469_v46  ;;  %v2748_v10 = vld [vmem:[%s3850_s1 + $0x94] sm:$0xf0]  ;;  %v2444_v11 = vld [vmem:[%s3850_s1 + $0x110] sm:$0xf]  ;;  %v2517_v12 = vor.u32 %v2782_v3, %v2516_v2  ;;  %v2308_v16 = vld [vmem:[%s3850_s1] sm:$0xf] }
  0x1d   : > { %1138 = vmatpush.bf16.msra.mxu3 %v2533_v50  ;;  %v2764_v13 = vld [vmem:[%s3850_s1 + $0x114] sm:$0xf0]  ;;  %v2508_v14 = vld [vmem:[%s3850_s1 + $0x190] sm:$0xf]  ;;  %v2730_v17 = vld [vmem:[%s3850_s1 + $0x4] sm:$0xf0]  ;;  %v2381_v23 = vor.u32 %v2748_v10, %v2380_v9 }
  0x1e   : > { %965 = vmatpush.bf16.msra.mxu0 %v2333_v56  ;;  %v2780_v15 = vld [vmem:[%s3850_s1 + $0x194] sm:$0xf0]  ;;  %v2372_v19 = vld [vmem:[%s3850_s1 + $0x80] sm:$0xf]  ;;  %v2746_v20 = vld [vmem:[%s3850_s1 + $0x84] sm:$0xf0]  ;;  %v2445_v24 = vor.u32 %v2764_v13, %v2444_v11  ;;  %v2309_v32 = vor.u32 %v2730_v17, %v2308_v16 }
  0x1f   : > { %1023 = vmatpush.bf16.msra.mxu1 %v2397_v57  ;;  %v2436_v21 = vld [vmem:[%s3850_s1 + $0x100] sm:$0xf]  ;;  %v2762_v22 = vld [vmem:[%s3850_s1 + $0x104] sm:$0xf0]  ;;  %v2743_v27 = vld [vmem:[%s3850_s1 + $0x74] sm:$0xf]  ;;  %v2509_v28 = vor.u32 %v2780_v15, %v2508_v14  ;;  %v2373_v35 = vor.u32 %v2746_v20, %v2372_v19 }
  0x20   : > { %1081 = vmatpush.bf16.msra.mxu2 %v2461_v58  ;;  %v2500_v25 = vld [vmem:[%s3850_s1 + $0x180] sm:$0xf]  ;;  %v2778_v26 = vld [vmem:[%s3850_s1 + $0x184] sm:$0xf0]  ;;  %s3860_s26 = smov (!%p327_p3, %s326_s26), 37  ;;  %v2437_v36 = vor.u32 %v2762_v22, %v2436_v21 }
  0x21   : > { %1139 = vmatpush.bf16.msra.mxu3 %v2525_v62  ;;  %v2366_v29 = vld [vmem:[%s3850_s1 + $0x78] sm:$0xf0]  ;;  %v2759_v30 = vld [vmem:[%s3850_s1 + $0xf4] sm:$0xf]  ;;  %s2692_s15 = sshll.u32 %s3860_s26, 4  ;;  %v2501_v41 = vor.u32 %v2778_v26, %v2500_v25  ;;  %s2161_s27 = sshll.u32 %s3860_s26, 2 }
  0x22   : > { %966 = vmatpush.bf16.msra.mxu0 %v2325_v4  ;;  %v2430_v31 = vld [vmem:[%s3850_s1 + $0xf8] sm:$0xf0]  ;;  %v2775_v33 = vld [vmem:[%s3850_s1 + $0x174] sm:$0xf]  ;;  %s3173_s21 = scalar_lea.vmem %s3849_s0, %s2692_s15  ;;  %v2741_v39 = vld [vmem:[%s3850_s1 + $0x64] sm:$0xf]  ;;  %v2369_v45 = vor.u32 %v2743_v27, %v2366_v29  ;;  %s3817_s11 = scalar_lea.vmem %s3858_s9, %s2161_s27 }
  0x23   : > { %1024 = vmatpush.bf16.msra.mxu1 %v2389_v7  ;;  %v2494_v34 = vld [vmem:[%s3850_s1 + $0x178] sm:$0xf0]  ;;  %v2791_v37 = vld [vmem:[%s3850_s1 + $0x1f4] sm:$0xf]  ;;  %v2358_v40 = vld [vmem:[%s3850_s1 + $0x68] sm:$0xf0]  ;;  %v2433_v51 = vor.u32 %v2759_v30, %v2430_v31 }
  0x24   : > { %1082 = vmatpush.bf16.msra.mxu2 %v2453_v8  ;;  %v2558_v38 = vld [vmem:[%s3850_s1 + $0x1f8] sm:$0xf0]  ;;  %v2164_v42 = vld [vmem:[%s3173_s21] sm:$0xf]  ;;  %v2695_v43 = vld [vmem:[%s3173_s21 + $0xc] sm:$0xf0]  ;;  %v2497_v58 = vor.u32 %v2775_v33, %v2494_v34  ;;  %v2361_v60 = vor.u32 %v2741_v39, %v2358_v40 }
  0x25   : > { %1140 = vmatpush.bf16.msra.mxu3 %v2517_v12  ;;  %v2693_v44 = vld [vmem:[%s3173_s21 + $0x4] sm:$0xf]  ;;  %v3193_v47 = vor.u32 %v2695_v43, %v2164_v42  ;;  %v2166_v48 = vld [vmem:[%s3173_s21 + $0x10] sm:$0xf0]  ;;  %v2172_v49 = vld [vmem:[%s3173_s21 + $0x8] sm:$0xf]  ;;  %v2561_v59 = vor.u32 %v2791_v37, %v2558_v38 }
  0x26   : > { %967 = vmatpush.bf16.msra.mxu0 %v2317_v18  ;;  %v2757_v46 = vld [vmem:[%s3850_s1 + $0xe4] sm:$0xf]  ;;  %v2696_v50 = vld [vmem:[%s3173_s21 + $0x14] sm:$0xf0]  ;;  %v3198_v52 = vor.u32 %v2693_v44, %v2166_v48  ;;  %v2694_v54 = vld [vmem:[%s3173_s21 + $0xc] sm:$0xf] }
  0x27   : > { %1025 = vmatpush.bf16.msra.mxu1 %v2381_v23  ;;  %v3200_v53 = vor.u32 %v2696_v50, %v2172_v49  ;;  %v2174_v55 = vld [vmem:[%s3173_s21 + $0x18] sm:$0xf0]  ;;  %v2422_v56 = vld [vmem:[%s3850_s1 + $0xe8] sm:$0xf0]  ;;  %v2773_v62 = vld [vmem:[%s3850_s1 + $0x164] sm:$0xf] }
  0x28   : > { %1083 = vmatpush.bf16.msra.mxu2 %v2445_v24  ;;  %v3207_v57 = vor.u32 %v2694_v54, %v2174_v55  ;;  %v2425_v61 = vor.u32 %v2757_v46, %v2422_v56  ;;  %v2486_v63 = vld [vmem:[%s3850_s1 + $0x168] sm:$0xf0]  ;;  %v2789_v0 = vld [vmem:[%s3850_s1 + $0x1e4] sm:$0xf]  ;;  %v2739_v3 = vld [vmem:[%s3850_s1 + $0x54] sm:$0xf] }
  0x29   : > { %1141 = vmatpush.bf16.msra.mxu3 %v2509_v28  ;;  %v2489_v1 = vor.u32 %v2773_v62, %v2486_v63  ;;  %v2550_v2 = vld [vmem:[%s3850_s1 + $0x1e8] sm:$0xf0]  ;;  %v2350_v4 = vld [vmem:[%s3850_s1 + $0x58] sm:$0xf0]  ;;  %v2755_v7 = vld [vmem:[%s3850_s1 + $0xd4] sm:$0xf] }
  0x2a   : > { %968 = vmatpush.bf16.msra.mxu0 %v2309_v32  ;;  %v2553_v5 = vor.u32 %v2789_v0, %v2550_v2  ;;  %v2353_v6 = vor.u32 %v2739_v3, %v2350_v4  ;;  %v2414_v8 = vld [vmem:[%s3850_s1 + $0xd8] sm:$0xf0]  ;;  %v2180_v10 = vld [vmem:[%s3173_s21 + $0x20] sm:$0xf]  ;;  %v2699_v11 = vld [vmem:[%s3173_s21 + $0x2c] sm:$0xf0] }
  0x2b   : > { %1026 = vmatpush.bf16.msra.mxu1 %v2373_v35  ;;  %v2417_v9 = vor.u32 %v2755_v7, %v2414_v8  ;;  %v2697_v12 = vld [vmem:[%s3173_s21 + $0x24] sm:$0xf]  ;;  %v2182_v13 = vld [vmem:[%s3173_s21 + $0x30] sm:$0xf0]  ;;  %v2188_v14 = vld [vmem:[%s3173_s21 + $0x28] sm:$0xf]  ;;  %v3245_v18 = vor.u32 %v2699_v11, %v2180_v10 }
  0x2c   : > { %1084 = vmatpush.bf16.msra.mxu2 %v2437_v36  ;;  %v2700_v15 = vld [vmem:[%s3173_s21 + $0x34] sm:$0xf0]  ;;  %v2698_v16 = vld [vmem:[%s3173_s21 + $0x2c] sm:$0xf]  ;;  %v2190_v17 = vld [vmem:[%s3173_s21 + $0x38] sm:$0xf0]  ;;  %v3247_v19 = vor.u32 %v2697_v12, %v2182_v13 }
  0x2d   : > { %1142 = vmatpush.bf16.msra.mxu3 %v2501_v41  ;;  %969 = vmatmul.bf16.vlgmr.msra.gmra.mxu0 %v3193_v47  ;;  %v3249_v20 = vor.u32 %v2700_v15, %v2188_v14  ;;  %v3251_v21 = vor.u32 %v2698_v16, %v2190_v17  ;;  %v2771_v22 = vld [vmem:[%s3850_s1 + $0x154] sm:$0xf]  ;;  %v2478_v23 = vld [vmem:[%s3850_s1 + $0x158] sm:$0xf0]  ;;  %v2737_v27 = vld [vmem:[%s3850_s1 + $0x44] sm:$0xf] }
  0x2e   : > { %1193 = vmatpush.bf16.msrb.mxu0 %v2369_v45  ;;  %1027 = vmatmul.bf16.vlgmr.msra.gmra.mxu1 %v3198_v52  ;;  %v2787_v24 = vld [vmem:[%s3850_s1 + $0x1d4] sm:$0xf]  ;;  %v2481_v25 = vor.u32 %v2771_v22, %v2478_v23  ;;  %v2542_v26 = vld [vmem:[%s3850_s1 + $0x1d8] sm:$0xf0]  ;;  %v2342_v28 = vld [vmem:[%s3850_s1 + $0x48] sm:$0xf0] }
  0x2f   : > { %1251 = vmatpush.bf16.msrb.mxu1 %v2433_v51  ;;  %1085 = vmatmul.bf16.vlgmr.msra.gmra.mxu2 %v3200_v53  ;;  %v2545_v29 = vor.u32 %v2787_v24, %v2542_v26  ;;  %v2345_v30 = vor.u32 %v2737_v27, %v2342_v28  ;;  %v2753_v31 = vld [vmem:[%s3850_s1 + $0xc4] sm:$0xf]  ;;  %v2406_v32 = vld [vmem:[%s3850_s1 + $0xc8] sm:$0xf0]  ;;  %v2196_v34 = vld [vmem:[%s3173_s21 + $0x40] sm:$0xf] }
  0x30   : > { %1143 = vmatmul.bf16.vlgmr.msra.gmra.mxu3 %v3207_v57  ;;  %1309 = vmatpush.bf16.msrb.mxu2 %v2497_v58  ;;  %v2409_v33 = vor.u32 %v2753_v31, %v2406_v32  ;;  %v2703_v35 = vld [vmem:[%s3173_s21 + $0x4c] sm:$0xf0]  ;;  %v2701_v36 = vld [vmem:[%s3173_s21 + $0x44] sm:$0xf]  ;;  %v2198_v37 = vld [vmem:[%s3173_s21 + $0x50] sm:$0xf0] }
  0x31   : > { %1367 = vmatpush.bf16.msrb.mxu3 %v2561_v59  ;;  %v2204_v38 = vld [vmem:[%s3173_s21 + $0x48] sm:$0xf]  ;;  %v2704_v39 = vld [vmem:[%s3173_s21 + $0x54] sm:$0xf0]  ;;  %v2702_v40 = vld [vmem:[%s3173_s21 + $0x4c] sm:$0xf]  ;;  %v3289_v42 = vor.u32 %v2703_v35, %v2196_v34  ;;  %v3291_v43 = vor.u32 %v2701_v36, %v2198_v37 }
  0x32   : > { %1194 = vmatpush.bf16.msrb.mxu0 %v2361_v60  ;;  %v2206_v41 = vld [vmem:[%s3173_s21 + $0x58] sm:$0xf0]  ;;  %v3293_v44 = vor.u32 %v2704_v39, %v2204_v38  ;;  %v2769_v46 = vld [vmem:[%s3850_s1 + $0x144] sm:$0xf]  ;;  %v2470_v48 = vld [vmem:[%s3850_s1 + $0x148] sm:$0xf0] }
  0x33   : > { %1252 = vmatpush.bf16.msrb.mxu1 %v2425_v61  ;;  %v3295_v45 = vor.u32 %v2702_v40, %v2206_v41  ;;  %v2785_v49 = vld [vmem:[%s3850_s1 + $0x1c4] sm:$0xf]  ;;  %v2473_v50 = vor.u32 %v2769_v46, %v2470_v48  ;;  %v2534_v51 = vld [vmem:[%s3850_s1 + $0x1c8] sm:$0xf0]  ;;  %v2212_v55 = vld [vmem:[%s3173_s21 + $0x60] sm:$0xf] }
  0x34   : > { %1310 = vmatpush.bf16.msrb.mxu2 %v2489_v1  ;;  %v2537_v54 = vor.u32 %v2785_v49, %v2534_v51  ;;  %v2707_v56 = vld [vmem:[%s3173_s21 + $0x6c] sm:$0xf0]  ;;  %v2705_v58 = vld [vmem:[%s3173_s21 + $0x64] sm:$0xf]  ;;  %v2214_v59 = vld [vmem:[%s3173_s21 + $0x70] sm:$0xf0] }
  0x35   : > { %1368 = vmatpush.bf16.msrb.mxu3 %v2553_v5  ;;  %v2220_v60 = vld [vmem:[%s3173_s21 + $0x68] sm:$0xf]  ;;  %v2708_v61 = vld [vmem:[%s3173_s21 + $0x74] sm:$0xf0]  ;;  %v2706_v62 = vld [vmem:[%s3173_s21 + $0x6c] sm:$0xf]  ;;  %v3321_v0 = vor.u32 %v2707_v56, %v2212_v55  ;;  %v3323_v1 = vor.u32 %v2705_v58, %v2214_v59 }
  0x36   : > { %1195 = vmatpush.bf16.msrb.mxu0 %v2353_v6  ;;  %v2222_v63 = vld [vmem:[%s3173_s21 + $0x78] sm:$0xf0]  ;;  %v3325_v2 = vor.u32 %v2708_v61, %v2220_v60  ;;  %v2735_v4 = vld [vmem:[%s3850_s1 + $0x34] sm:$0xf]  ;;  %v2228_v13 = vld [vmem:[%s3173_s21 + $0x80] sm:$0xf] }
  0x37   : > { %1253 = vmatpush.bf16.msrb.mxu1 %v2417_v9  ;;  %v3327_v3 = vor.u32 %v2706_v62, %v2222_v63  ;;  %v2334_v5 = vld [vmem:[%s3850_s1 + $0x38] sm:$0xf0]  ;;  %v2751_v7 = vld [vmem:[%s3850_s1 + $0xb4] sm:$0xf]  ;;  %v2711_v14 = vld [vmem:[%s3173_s21 + $0x8c] sm:$0xf0] }
  0x38   : > { %1311 = vmatpush.bf16.msrb.mxu2 %v2481_v25  ;;  %v2337_v6 = vor.u32 %v2735_v4, %v2334_v5  ;;  %v2398_v8 = vld [vmem:[%s3850_s1 + $0xb8] sm:$0xf0]  ;;  %v2767_v9 = vld [vmem:[%s3850_s1 + $0x134] sm:$0xf]  ;;  %v2709_v15 = vld [vmem:[%s3173_s21 + $0x84] sm:$0xf]  ;;  %v3359_v25 = vor.u32 %v2711_v14, %v2228_v13 }
  0x39   : > { %1369 = vmatpush.bf16.msrb.mxu3 %v2545_v29  ;;  %v2401_v10 = vor.u32 %v2751_v7, %v2398_v8  ;;  %v2462_v11 = vld [vmem:[%s3850_s1 + $0x138] sm:$0xf0]  ;;  %v2230_v16 = vld [vmem:[%s3173_s21 + $0x90] sm:$0xf0]  ;;  %v2236_v17 = vld [vmem:[%s3173_s21 + $0x88] sm:$0xf] }
  0x3a   : > { %1196 = vmatpush.bf16.msrb.mxu0 %v2345_v30  ;;  %v2465_v12 = vor.u32 %v2767_v9, %v2462_v11  ;;  %v2712_v22 = vld [vmem:[%s3173_s21 + $0x94] sm:$0xf0]  ;;  %v2710_v23 = vld [vmem:[%s3173_s21 + $0x8c] sm:$0xf]  ;;  %v2238_v24 = vld [vmem:[%s3173_s21 + $0x98] sm:$0xf0]  ;;  %v3361_v26 = vor.u32 %v2709_v15, %v2230_v16 }
  0x3b   : > { %1254 = vmatpush.bf16.msrb.mxu1 %v2409_v33  ;;  %v3363_v27 = vor.u32 %v2712_v22, %v2236_v17  ;;  %v3365_v28 = vor.u32 %v2710_v23, %v2238_v24  ;;  %v2783_v29 = vld [vmem:[%s3850_s1 + $0x1b4] sm:$0xf]  ;;  %v2526_v30 = vld [vmem:[%s3850_s1 + $0x1b8] sm:$0xf0]  ;;  %v2733_v32 = vld [vmem:[%s3850_s1 + $0x24] sm:$0xf] }
  0x3c   : > { %1312 = vmatpush.bf16.msrb.mxu2 %v2473_v50  ;;  %v2529_v31 = vor.u32 %v2783_v29, %v2526_v30  ;;  %v2326_v33 = vld [vmem:[%s3850_s1 + $0x28] sm:$0xf0]  ;;  %v2749_v34 = vld [vmem:[%s3850_s1 + $0xa4] sm:$0xf]  ;;  %v2244_v38 = vld [vmem:[%s3173_s21 + $0xa0] sm:$0xf] }
  0x3d   : > { %974 = vmatmul.bf16.gmra.mxu0 %v3245_v18  ;;  %1370 = vmatpush.bf16.msrb.mxu3 %v2537_v54  ;;  %v2329_v35 = vor.u32 %v2733_v32, %v2326_v33  ;;  %v2390_v36 = vld [vmem:[%s3850_s1 + $0xa8] sm:$0xf0]  ;;  %v2715_v39 = vld [vmem:[%s3173_s21 + $0xac] sm:$0xf0]  ;;  %v2713_v40 = vld [vmem:[%s3173_s21 + $0xa4] sm:$0xf] }
  0x3e   : > { %1032 = vmatmul.bf16.gmra.mxu1 %v3247_v19  ;;  %1197 = vmatpush.bf16.msrb.mxu0 %v2337_v6  ;;  %v2393_v37 = vor.u32 %v2749_v34, %v2390_v36  ;;  %v2246_v41 = vld [vmem:[%s3173_s21 + $0xb0] sm:$0xf0]  ;;  %v2252_v46 = vld [vmem:[%s3173_s21 + $0xa8] sm:$0xf]  ;;  %v2716_v48 = vld [vmem:[%s3173_s21 + $0xb4] sm:$0xf0]  ;;  %v3397_v51 = vor.u32 %v2715_v39, %v2244_v38 }
  0x3f   : > { %1090 = vmatmul.bf16.gmra.mxu2 %v3249_v20  ;;  %1255 = vmatpush.bf16.msrb.mxu1 %v2401_v10  ;;  %v2714_v49 = vld [vmem:[%s3173_s21 + $0xac] sm:$0xf]  ;;  %v2254_v50 = vld [vmem:[%s3173_s21 + $0xb8] sm:$0xf0]  ;;  %v3399_v54 = vor.u32 %v2713_v40, %v2246_v41  ;;  %v3401_v55 = vor.u32 %v2716_v48, %v2252_v46  ;;  %v2765_v58 = vld [vmem:[%s3850_s1 + $0x124] sm:$0xf] }
  0x40   : > { %1148 = vmatmul.bf16.gmra.mxu3 %v3251_v21  ;;  %1313 = vmatpush.bf16.msrb.mxu2 %v2465_v12  ;;  %v3403_v56 = vor.u32 %v2714_v49, %v2254_v50  ;;  %v2454_v59 = vld [vmem:[%s3850_s1 + $0x128] sm:$0xf0]  ;;  %v2781_v60 = vld [vmem:[%s3850_s1 + $0x1a4] sm:$0xf]  ;;  %v2731_v63 = vld [vmem:[%s3850_s1 + $0x14] sm:$0xf] }
  0x41   : > { %1371 = vmatpush.bf16.msrb.mxu3 %v2529_v31  ;;  %v2457_v61 = vor.u32 %v2765_v58, %v2454_v59  ;;  %v2518_v62 = vld [vmem:[%s3850_s1 + $0x1a8] sm:$0xf0]  ;;  %v2318_v4 = vld [vmem:[%s3850_s1 + $0x18] sm:$0xf0]  ;;  %v2747_v7 = vld [vmem:[%s3850_s1 + $0x94] sm:$0xf] }
  0x42   : > { %1198 = vmatpush.bf16.msrb.mxu0 %v2329_v35  ;;  %v2521_v5 = vor.u32 %v2781_v60, %v2518_v62  ;;  %v2321_v6 = vor.u32 %v2731_v63, %v2318_v4  ;;  %v2382_v8 = vld [vmem:[%s3850_s1 + $0x98] sm:$0xf0]  ;;  %v2260_v10 = vld [vmem:[%s3173_s21 + $0xc0] sm:$0xf]  ;;  %v2719_v11 = vld [vmem:[%s3173_s21 + $0xcc] sm:$0xf0] }
  0x43   : > { %1256 = vmatpush.bf16.msrb.mxu1 %v2393_v37  ;;  %v2385_v9 = vor.u32 %v2747_v7, %v2382_v8  ;;  %v2717_v12 = vld [vmem:[%s3173_s21 + $0xc4] sm:$0xf]  ;;  %v2262_v13 = vld [vmem:[%s3173_s21 + $0xd0] sm:$0xf0]  ;;  %v2268_v14 = vld [vmem:[%s3173_s21 + $0xc8] sm:$0xf]  ;;  %v3441_v22 = vor.u32 %v2719_v11, %v2260_v10 }
  0x44   : > { %1314 = vmatpush.bf16.msrb.mxu2 %v2457_v61  ;;  %v2720_v15 = vld [vmem:[%s3173_s21 + $0xd4] sm:$0xf0]  ;;  %v2718_v16 = vld [vmem:[%s3173_s21 + $0xcc] sm:$0xf]  ;;  %v2270_v17 = vld [vmem:[%s3173_s21 + $0xd8] sm:$0xf0]  ;;  %v3443_v23 = vor.u32 %v2717_v12, %v2262_v13 }
  0x45   : > { %1372 = vmatpush.bf16.msrb.mxu3 %v2521_v5  ;;  %v3445_v24 = vor.u32 %v2720_v15, %v2268_v14  ;;  %v3447_v29 = vor.u32 %v2718_v16, %v2270_v17  ;;  %v2276_v30 = vld [vmem:[%s3173_s21 + $0xe0] sm:$0xf]  ;;  %v2723_v31 = vld [vmem:[%s3173_s21 + $0xec] sm:$0xf0]  ;;  %v2721_v32 = vld [vmem:[%s3173_s21 + $0xe4] sm:$0xf] }
  0x46   : > { %1199 = vmatpush.bf16.msrb.mxu0 %v2321_v6  ;;  %v2278_v33 = vld [vmem:[%s3173_s21 + $0xf0] sm:$0xf0]  ;;  %v2446_v35 = vld [vmem:[%s3850_s1 + $0x118] sm:$0xf0]  ;;  %v2284_v37 = vld [vmem:[%s3173_s21 + $0xe8] sm:$0xf]  ;;  %v3473_v49 = vor.u32 %v2723_v31, %v2276_v30 }
  0x47   : > { %1257 = vmatpush.bf16.msrb.mxu1 %v2385_v9  ;;  %v2763_v34 = vld [vmem:[%s3850_s1 + $0x114] sm:$0xf]  ;;  %v2724_v38 = vld [vmem:[%s3173_s21 + $0xf4] sm:$0xf0]  ;;  %v2510_v40 = vld [vmem:[%s3850_s1 + $0x198] sm:$0xf0]  ;;  %v3475_v50 = vor.u32 %v2721_v32, %v2278_v33 }
  0x48   : > { %v2779_v36 = vld [vmem:[%s3850_s1 + $0x194] sm:$0xf]  ;;  %v2449_v39 = vor.u32 %v2763_v34, %v2446_v35  ;;  %v2722_v41 = vld [vmem:[%s3173_s21 + $0xec] sm:$0xf]  ;;  %v2286_v46 = vld [vmem:[%s3173_s21 + $0xf8] sm:$0xf0]  ;;  %v3477_v58 = vor.u32 %v2724_v38, %v2284_v37 }
  0x49   : > { %v2513_v48 = vor.u32 %v2779_v36, %v2510_v40  ;;  %v2729_v59 = vld [vmem:[%s3850_s1 + $0x4] sm:$0xf]  ;;  %v2310_v60 = vld [vmem:[%s3850_s1 + $0x8] sm:$0xf0]  ;;  %v3485_v61 = vor.u32 %v2722_v41, %v2286_v46  ;;  %v3500_v6 = vld [vmem:[%s3851_s2] sm:$0x3] }
  0x4a   : > { %1315 = vmatpush.bf16.msrb.mxu2 %v2449_v39  ;;  %v2313_v62 = vor.u32 %v2729_v59, %v2310_v60  ;;  %v2745_v63 = vld [vmem:[%s3850_s1 + $0x84] sm:$0xf]  ;;  %v2374_v4 = vld [vmem:[%s3850_s1 + $0x88] sm:$0xf0]  ;;  %v3503_v7 = vperm.slane %v3500_v6, 0  ;;  %v2800_v46 = vld [vmem:[%s3852_s3 + $0x38] sm:$0xff] }
  0x4b   : > { %1373 = vmatpush.bf16.msrb.mxu3 %v2513_v48  ;;  %v2377_v5 = vor.u32 %v2745_v63, %v2374_v4  ;;  %v2292_v8 = vld [vmem:[%s3173_s21 + $0x100] sm:$0xf]  ;;  %v2727_v9 = vld [vmem:[%s3173_s21 + $0x10c] sm:$0xf0]  ;;  %v2725_v10 = vld [vmem:[%s3173_s21 + $0x104] sm:$0xf] }
  0x4c   : > { %1200 = vmatpush.bf16.msrb.mxu0 %v2313_v62  ;;  %v2761_v11 = vld [vmem:[%s3850_s1 + $0x104] sm:$0xf]  ;;  %v2438_v12 = vld [vmem:[%s3850_s1 + $0x108] sm:$0xf0]  ;;  %v2294_v13 = vld [vmem:[%s3173_s21 + $0x110] sm:$0xf0]  ;;  %v3519_v31 = vor.u32 %v2727_v9, %v2292_v8 }
  0x4d   : > { %979 = vmatmul.bf16.gmra.mxu0 %v3289_v42  ;;  %1258 = vmatpush.bf16.msrb.mxu1 %v2377_v5  ;;  %v2300_v14 = vld [vmem:[%s3173_s21 + $0x108] sm:$0xf]  ;;  %v2728_v15 = vld [vmem:[%s3173_s21 + $0x114] sm:$0xf0]  ;;  %v2441_v16 = vor.u32 %v2761_v11, %v2438_v12  ;;  %v2726_v17 = vld [vmem:[%s3173_s21 + $0x10c] sm:$0xf]  ;;  %v3521_v33 = vor.u32 %v2725_v10, %v2294_v13 }
  0x4e   : > { %1037 = vmatmul.bf16.gmra.mxu1 %v3291_v43  ;;  %v2302_v30 = vld [vmem:[%s3173_s21 + $0x118] sm:$0xf0]  ;;  %v3523_v34 = vor.u32 %v2728_v15, %v2300_v14  ;;  %v2777_v35 = vld [vmem:[%s3850_s1 + $0x184] sm:$0xf]  ;;  %v2502_v36 = vld [vmem:[%s3850_s1 + $0x188] sm:$0xf0] }
  0x4f   : > { %1095 = vmatmul.bf16.gmra.mxu2 %v3293_v44  ;;  %v3532_v39 = vor.u32 %v2726_v17, %v2302_v30  ;;  %v2505_v40 = vor.u32 %v2777_v35, %v2502_v36  ;;  %v2808_v48 = vld [vmem:[%s3852_s3 + $0x78] sm:$0xff]  ;;  %v375_v4 = vld [vmem:[%s3173_s21 + $0x120] sm:$0xff]  ;;  %v376_v9 = vld [vmem:[%s3173_s21 + $0x128] sm:$0xff] }
  0x50   : > { %1153 = vmatmul.bf16.gmra.mxu3 %v3295_v45  ;;  %1316 = vmatpush.bf16.msrb.mxu2 %v2441_v16  ;;  %v557_v12 = vunpack.c.l.b16 %v375_v4  ;;  %v558_v13 = vunpack.c.h.b16 %v375_v4  ;;  %v559_v14 = vunpack.c.l.b16 %v376_v9  ;;  %v560_v15 = vunpack.c.h.b16 %v376_v9  ;;  %v2799_v9 = vld [vmem:[%s3852_s3 + $0x30] sm:$0xff] }
  0x51   : > { %1374 = vmatpush.bf16.msrb.mxu3 %v2505_v40  ;;  %1615 = vmatpush.bf16.msra.mxu0 %v2800_v46 }
  0x52   : > { %1673 = vmatpush.bf16.msra.mxu1 %v2808_v48  ;;  %v3547_v17 = vpack.c.b16 %v557_v12, %v557_v12  ;;  %v3549_v36 = vpack.c.b16 %v558_v13, %v558_v13 }
  0x55   : > { %1616 = vmatpush.bf16.msra.mxu0 %v2799_v9 }
  0x5d   : > { %984 = vmatmul.bf16.gmra.mxu0 %v3321_v0 }
  0x5e   : > { %1042 = vmatmul.bf16.gmra.mxu1 %v3323_v1 }
  0x5f   : > { %1100 = vmatmul.bf16.gmra.mxu2 %v3325_v2 }
  0x60   : > { %1158 = vmatmul.bf16.gmra.mxu3 %v3327_v3 }
  0x6d   : > { %989 = vmatmul.bf16.gmra.mxu0 %v3359_v25 }
  0x6e   : > { %1047 = vmatmul.bf16.gmra.mxu1 %v3361_v26 }
  0x6f   : > { %1105 = vmatmul.bf16.gmra.mxu2 %v3363_v27 }
  0x70   : > { %1163 = vmatmul.bf16.gmra.mxu3 %v3365_v28 }
  0x7d   : > { %994 = vmatmul.bf16.gmra.mxu0 %v3397_v51 }
  0x7e   : > { %1052 = vmatmul.bf16.gmra.mxu1 %v3399_v54 }
  0x7f   : > { %1110 = vmatmul.bf16.gmra.mxu2 %v3401_v55 }
  0x80   : > { %1168 = vmatmul.bf16.gmra.mxu3 %v3403_v56 }
  0x8d   : > { %999 = vmatmul.bf16.gmra.mxu0 %v3441_v22 }
  0x8e   : > { %1057 = vmatmul.bf16.gmra.mxu1 %v3443_v23 }
  0x8f   : > { %1115 = vmatmul.bf16.gmra.mxu2 %v3445_v24 }
  0x90   : > { %1173 = vmatmul.bf16.gmra.mxu3 %v3447_v29 }
  0x9d   : > { %1004 = vmatmul.bf16.gmra.mxu0 %v3473_v49 }
  0x9e   : > { %1062 = vmatmul.bf16.gmra.mxu1 %v3475_v50 }
  0x9f   : > { %1120 = vmatmul.bf16.gmra.mxu2 %v3477_v58 }
  0xa0   : > { %1178 = vmatmul.bf16.gmra.mxu3 %v3485_v61 }
  0xaa   : > { %v970_v32 = vpop.f32.mrf.mxu0 }
  0xab   : > { %v971_v37 = vadd.f32 %v970_v32, %v3503_v7  ;;  %v1028_v38 = vpop.f32.mrf.mxu1 }
  0xad   : > { %v1029_v41 = vadd.f32 %v1028_v38, %v971_v37  ;;  %1009 = vmatmul.bf16.gmra.mxu0 %v3519_v31  ;;  %v3551_v37 = vpack.c.b16 %v559_v14, %v559_v14  ;;  %v2807_v14 = vld [vmem:[%s3852_s3 + $0x70] sm:$0xff] }
  0xae   : > { %1067 = vmatmul.bf16.gmra.mxu1 %v3521_v33 }
  0xaf   : > { %1125 = vmatmul.bf16.gmra.mxu2 %v3523_v34  ;;  %1674 = vmatpush.bf16.msra.mxu1 %v2807_v14 }
  0xb0   : > { %1183 = vmatmul.bf16.gmra.mxu3 %v3532_v39 }
  0xb2   : > { %v1086_v59 = vpop.f32.mrf.mxu2  ;;  %v972_v62 = vpop.f32.mrf.mxu0 }
  0xb3   : > { %v1087_v60 = vadd.f32 %v1086_v59, %v1029_v41  ;;  %v1144_v63 = vpop.f32.mrf.mxu3  ;;  %v973_v5 = vadd.f32 %v972_v62, %v3503_v7  ;;  %v1030_v8 = vpop.f32.mrf.mxu1  ;;  %v3554_v41 = vpack.c.b16 %v560_v15, %v560_v15 }
  0xb5   : > { %v1145_v10 = vadd.f32 %v1144_v63, %v1087_v60  ;;  %v1031_v11 = vadd.f32 %v1030_v8, %v973_v5 }
  0xb7   : > { %v1425_v59 = vmax.f32 %v1145_v10, 0.0 }
  0xba   : > { %v1088_v16 = vpop.f32.mrf.mxu2  ;;  %v975_v32 = vpop.f32.mrf.mxu0 }
  0xbb   : > { %v1089_v30 = vadd.f32 %v1088_v16, %v1031_v11  ;;  %v1146_v35 = vpop.f32.mrf.mxu3  ;;  %v976_v38 = vadd.f32 %v975_v32, %v3503_v7  ;;  %v1033_v40 = vpop.f32.mrf.mxu1 }
  0xbd   : > { %v1147_v46 = vadd.f32 %v1146_v35, %v1089_v30  ;;  %v1034_v48 = vadd.f32 %v1033_v40, %v976_v38  ;;  %1014 = vmatmul.bf16.gmra.mxu0 %v3547_v17 }
  0xbe   : > { %1072 = vmatmul.bf16.gmra.mxu1 %v3549_v36 }
  0xbf   : > { %v1427_v60 = vmax.f32 %v1147_v46, 0.0  ;;  %1130 = vmatmul.bf16.gmra.mxu2 %v3551_v37 }
  0xc0   : > { %1188 = vmatmul.bf16.gmra.mxu3 %v3554_v41 }
  0xc1   : > { %v3560_v62 = vpack.c.bf16 %v1427_v60, %v1425_v59 }
  0xc2   : > { %v1091_v63 = vpop.f32.mrf.mxu2  ;;  %v977_v5 = vpop.f32.mrf.mxu0 }
  0xc3   : > { %v1092_v4 = vadd.f32 %v1091_v63, %v1034_v48  ;;  %v1149_v8 = vpop.f32.mrf.mxu3  ;;  %v978_v11 = vadd.f32 %v977_v5, %v3503_v7  ;;  %v1035_v10 = vpop.f32.mrf.mxu1 }
  0xc5   : > { %v1150_v12 = vadd.f32 %v1149_v8, %v1092_v4  ;;  %v1036_v13 = vadd.f32 %v1035_v10, %v978_v11 }
  0xc7   : > { %v1429_v48 = vmax.f32 %v1150_v12, 0.0 }
  0xca   : > { %v1093_v15 = vpop.f32.mrf.mxu2  ;;  %v980_v30 = vpop.f32.mrf.mxu0 }
  0xcb   : > { %v1094_v16 = vadd.f32 %v1093_v15, %v1036_v13  ;;  %v1151_v32 = vpop.f32.mrf.mxu3  ;;  %v981_v35 = vadd.f32 %v980_v30, %v3503_v7  ;;  %v1038_v38 = vpop.f32.mrf.mxu1 }
  0xcd   : > { %v1152_v40 = vadd.f32 %v1151_v32, %v1094_v16  ;;  %v1039_v46 = vadd.f32 %v1038_v38, %v981_v35  ;;  %1201 = vmatmul.bf16.vlgmr.msrb.gmra.mxu0 %v3193_v47  ;;  %v2798_v47 = vld [vmem:[%s3852_s3 + $0x28] sm:$0xff] }
  0xce   : > { %1259 = vmatmul.bf16.vlgmr.msrb.gmra.mxu1 %v3198_v52  ;;  %v2806_v52 = vld [vmem:[%s3852_s3 + $0x68] sm:$0xff]  ;;  %1617 = vmatpush.bf16.msra.mxu0 %v2798_v47 }
  0xcf   : > { %v1431_v59 = vmax.f32 %v1152_v40, 0.0  ;;  %1317 = vmatmul.bf16.vlgmr.msrb.gmra.mxu2 %v3200_v53  ;;  %1675 = vmatpush.bf16.msra.mxu1 %v2806_v52 }
  0xd0   : > { %1375 = vmatmul.bf16.vlgmr.msrb.gmra.mxu3 %v3207_v57 }
  0xd1   : > { %v3574_v60 = vpack.c.bf16 %v1431_v59, %v1429_v48 }
  0xd2   : > { %v1096_v63 = vpop.f32.mrf.mxu2  ;;  %v982_v5 = vpop.f32.mrf.mxu0 }
  0xd3   : > { %v1097_v4 = vadd.f32 %v1096_v63, %v1039_v46  ;;  %v1154_v8 = vpop.f32.mrf.mxu3  ;;  %v983_v9 = vadd.f32 %v982_v5, %v3503_v7  ;;  %v1040_v11 = vpop.f32.mrf.mxu1 }
  0xd5   : > { %v1155_v10 = vadd.f32 %v1154_v8, %v1097_v4  ;;  %v1041_v13 = vadd.f32 %v1040_v11, %v983_v9 }
  0xd7   : > { %v1433_v35 = vmax.f32 %v1155_v10, 0.0 }
  0xda   : > { %v1098_v53 = vpop.f32.mrf.mxu2  ;;  %v985_v12 = vpop.f32.mrf.mxu0 }
  0xdb   : > { %v1099_v57 = vadd.f32 %v1098_v53, %v1041_v13  ;;  %v1156_v14 = vpop.f32.mrf.mxu3  ;;  %v986_v15 = vadd.f32 %v985_v12, %v3503_v7  ;;  %v1043_v16 = vpop.f32.mrf.mxu1  ;;  %v2805_v12 = vld [vmem:[%s3852_s3 + $0x60] sm:$0xff] }
  0xdc   : > { %1676 = vmatpush.bf16.msra.mxu1 %v2805_v12 }
  0xdd   : > { %v1157_v30 = vadd.f32 %v1156_v14, %v1099_v57  ;;  %v1044_v32 = vadd.f32 %v1043_v16, %v986_v15  ;;  %1206 = vmatmul.bf16.gmra.mxu0 %v3245_v18 }
  0xde   : > { %1264 = vmatmul.bf16.gmra.mxu1 %v3247_v19  ;;  %v2797_v19 = vld [vmem:[%s3852_s3 + $0x20] sm:$0xff] }
  0xdf   : > { %v1435_v38 = vmax.f32 %v1157_v30, 0.0  ;;  %1322 = vmatmul.bf16.gmra.mxu2 %v3249_v20  ;;  %1618 = vmatpush.bf16.msra.mxu0 %v2797_v19 }
  0xe0   : > { %1380 = vmatmul.bf16.gmra.mxu3 %v3251_v21 }
  0xe1   : > { %v3588_v40 = vpack.c.bf16 %v1435_v38, %v1433_v35 }
  0xe2   : > { %v1101_v46 = vpop.f32.mrf.mxu2  ;;  %v987_v59 = vpop.f32.mrf.mxu0 }
  0xe3   : > { %v1102_v48 = vadd.f32 %v1101_v46, %v1044_v32  ;;  %v1159_v63 = vpop.f32.mrf.mxu3  ;;  %v988_v4 = vadd.f32 %v987_v59, %v3503_v7  ;;  %v1045_v5 = vpop.f32.mrf.mxu1 }
  0xe5   : > { %v1160_v8 = vadd.f32 %v1159_v63, %v1102_v48  ;;  %v1046_v9 = vadd.f32 %v1045_v5, %v988_v4 }
  0xe7   : > { %v1437_v53 = vmax.f32 %v1160_v8, 0.0 }
  0xea   : > { %v1103_v18 = vpop.f32.mrf.mxu2  ;;  %v990_v10 = vpop.f32.mrf.mxu0 }
  0xeb   : > { %v1104_v11 = vadd.f32 %v1103_v18, %v1046_v9  ;;  %v1161_v13 = vpop.f32.mrf.mxu3  ;;  %v991_v20 = vadd.f32 %v990_v10, %v3503_v7  ;;  %v1048_v21 = vpop.f32.mrf.mxu1  ;;  %v2796_v18 = vld [vmem:[%s3852_s3 + $0x18] sm:$0xff] }
  0xec   : > { %1619 = vmatpush.bf16.msra.mxu0 %v2796_v18 }
  0xed   : > { %v1162_v47 = vadd.f32 %v1161_v13, %v1104_v11  ;;  %v1049_v52 = vadd.f32 %v1048_v21, %v991_v20  ;;  %1211 = vmatmul.bf16.gmra.mxu0 %v3289_v42  ;;  %v2804_v11 = vld [vmem:[%s3852_s3 + $0x58] sm:$0xff] }
  0xee   : > { %1269 = vmatmul.bf16.gmra.mxu1 %v3291_v43 }
  0xef   : > { %v1439_v57 = vmax.f32 %v1162_v47, 0.0  ;;  %1327 = vmatmul.bf16.gmra.mxu2 %v3293_v44  ;;  %1677 = vmatpush.bf16.msra.mxu1 %v2804_v11 }
  0xf0   : > { %1385 = vmatmul.bf16.gmra.mxu3 %v3295_v45 }
  0xf1   : > { %v3602_v14 = vpack.c.bf16 %v1439_v57, %v1437_v53 }
  0xf2   : > { %v1106_v15 = vpop.f32.mrf.mxu2  ;;  %v992_v30 = vpop.f32.mrf.mxu0 }
  0xf3   : > { %v1107_v16 = vadd.f32 %v1106_v15, %v1049_v52  ;;  %v1164_v32 = vpop.f32.mrf.mxu3  ;;  %v993_v42 = vadd.f32 %v992_v30, %v3503_v7  ;;  %v1050_v35 = vpop.f32.mrf.mxu1 }
  0xf5   : > { %v1165_v38 = vadd.f32 %v1164_v32, %v1107_v16  ;;  %v1051_v43 = vadd.f32 %v1050_v35, %v993_v42 }
  0xf7   : > { %v1441_v8 = vmax.f32 %v1165_v38, 0.0 }
  0xfa   : > { %v1108_v46 = vpop.f32.mrf.mxu2  ;;  %v995_v48 = vpop.f32.mrf.mxu0 }
  0xfb   : > { %v1109_v44 = vadd.f32 %v1108_v46, %v1051_v43  ;;  %v1166_v59 = vpop.f32.mrf.mxu3  ;;  %v996_v63 = vadd.f32 %v995_v48, %v3503_v7  ;;  %v1053_v4 = vpop.f32.mrf.mxu1  ;;  %v2795_v48 = vld [vmem:[%s3852_s3 + $0x10] sm:$0xff] }
  0xfc   : > { %1620 = vmatpush.bf16.msra.mxu0 %v2795_v48 }
  0xfd   : > { %v1167_v45 = vadd.f32 %v1166_v59, %v1109_v44  ;;  %v1054_v5 = vadd.f32 %v1053_v4, %v996_v63  ;;  %1216 = vmatmul.bf16.gmra.mxu0 %v3321_v0 }
  0xfe   : > { %1274 = vmatmul.bf16.gmra.mxu1 %v3323_v1 }
  0xff   : > { %v1443_v9 = vmax.f32 %v1167_v45, 0.0  ;;  %1332 = vmatmul.bf16.gmra.mxu2 %v3325_v2 }
 0x100   : > { %1390 = vmatmul.bf16.gmra.mxu3 %v3327_v3 }
 0x101   : > { %v3616_v10 = vpack.c.bf16 %v1443_v9, %v1441_v8 }
 0x102   : > { %v1111_v0 = vpop.f32.mrf.mxu2  ;;  %v997_v19 = vpop.f32.mrf.mxu0 }
 0x103   : > { %v1112_v13 = vadd.f32 %v1111_v0, %v1054_v5  ;;  %v1169_v1 = vpop.f32.mrf.mxu3  ;;  %v998_v2 = vadd.f32 %v997_v19, %v3503_v7  ;;  %v1055_v20 = vpop.f32.mrf.mxu1 }
 0x105   : > { %v1170_v21 = vadd.f32 %v1169_v1, %v1112_v13  ;;  %v1056_v47 = vadd.f32 %v1055_v20, %v998_v2 }
 0x107   : > { %v1445_v32 = vmax.f32 %v1170_v21, 0.0 }
 0x10a   : > { %v1113_v52 = vpop.f32.mrf.mxu2  ;;  %v1000_v3 = vpop.f32.mrf.mxu0 }
 0x10b   : > { %v1114_v53 = vadd.f32 %v1113_v52, %v1056_v47  ;;  %v1171_v57 = vpop.f32.mrf.mxu3  ;;  %v1001_v12 = vadd.f32 %v1000_v3, %v3503_v7  ;;  %v1058_v15 = vpop.f32.mrf.mxu1 }
 0x10d   : > { %v1172_v16 = vadd.f32 %v1171_v57, %v1114_v53  ;;  %v1059_v30 = vadd.f32 %v1058_v15, %v1001_v12  ;;  %1221 = vmatmul.bf16.gmra.mxu0 %v3359_v25 }
 0x10e   : > { %1279 = vmatmul.bf16.gmra.mxu1 %v3361_v26 }
 0x10f   : > { %v1447_v42 = vmax.f32 %v1172_v16, 0.0  ;;  %1337 = vmatmul.bf16.gmra.mxu2 %v3363_v27  ;;  %v2803_v27 = vld [vmem:[%s3852_s3 + $0x50] sm:$0xff] }
 0x110   : > { %1395 = vmatmul.bf16.gmra.mxu3 %v3365_v28  ;;  %1678 = vmatpush.bf16.msra.mxu1 %v2803_v27 }
 0x111   : > { %v3624_v35 = vpack.c.bf16 %v1447_v42, %v1445_v32 }
 0x112   : > { %v1116_v38 = vpop.f32.mrf.mxu2  ;;  %v1002_v46 = vpop.f32.mrf.mxu0 }
 0x113   : > { %v1117_v43 = vadd.f32 %v1116_v38, %v1059_v30  ;;  %v1174_v44 = vpop.f32.mrf.mxu3  ;;  %v1003_v25 = vadd.f32 %v1002_v46, %v3503_v7  ;;  %v1060_v59 = vpop.f32.mrf.mxu1 }
 0x115   : > { %v1175_v63 = vadd.f32 %v1174_v44, %v1117_v43  ;;  %v1061_v26 = vadd.f32 %v1060_v59, %v1003_v25 }
 0x117   : > { %v1449_v0 = vmax.f32 %v1175_v63, 0.0 }
 0x11a   : > { %v1118_v28 = vpop.f32.mrf.mxu2  ;;  %v1005_v45 = vpop.f32.mrf.mxu0 }
 0x11b   : > { %v1119_v4 = vadd.f32 %v1118_v28, %v1061_v26  ;;  %v1176_v5 = vpop.f32.mrf.mxu3  ;;  %v1006_v8 = vadd.f32 %v1005_v45, %v3503_v7  ;;  %v1063_v9 = vpop.f32.mrf.mxu1 }
 0x11d   : > { %v1177_v18 = vadd.f32 %v1176_v5, %v1119_v4  ;;  %v1064_v11 = vadd.f32 %v1063_v9, %v1006_v8  ;;  %1226 = vmatmul.bf16.gmra.mxu0 %v3397_v51  ;;  %v2794_v51 = vld [vmem:[%s3852_s3 + $0x8] sm:$0xff] }
 0x11e   : > { %1284 = vmatmul.bf16.gmra.mxu1 %v3399_v54  ;;  %v2802_v54 = vld [vmem:[%s3852_s3 + $0x48] sm:$0xff]  ;;  %1621 = vmatpush.bf16.msra.mxu0 %v2794_v51 }
 0x11f   : > { %v1451_v13 = vmax.f32 %v1177_v18, 0.0  ;;  %1342 = vmatmul.bf16.gmra.mxu2 %v3401_v55  ;;  %1679 = vmatpush.bf16.msra.mxu1 %v2802_v54 }
 0x120   : > { %1400 = vmatmul.bf16.gmra.mxu3 %v3403_v56 }
 0x121   : > { %v3638_v19 = vpack.c.bf16 %v1451_v13, %v1449_v0 }
 0x122   : > { %v1121_v1 = vpop.f32.mrf.mxu2  ;;  %v1007_v20 = vpop.f32.mrf.mxu0 }
 0x123   : > { %v1122_v2 = vadd.f32 %v1121_v1, %v1064_v11  ;;  %v1179_v21 = vpop.f32.mrf.mxu3  ;;  %v1008_v47 = vadd.f32 %v1007_v20, %v3503_v7  ;;  %v1065_v52 = vpop.f32.mrf.mxu1  ;;  %v2801_v11 = vld [vmem:[%s3852_s3 + $0x40] sm:$0xff] }
 0x124   : > { %1680 = vmatpush.bf16.msra.mxu1 %v2801_v11 }
 0x125   : > { %v1180_v53 = vadd.f32 %v1179_v21, %v1122_v2  ;;  %v1066_v3 = vadd.f32 %v1065_v52, %v1008_v47  ;;  %v2815_v52 = vld [vmem:[%s3854_s5 + $0x30] sm:$0xff] }
 0x127   : > { %v1453_v42 = vmax.f32 %v1180_v53, 0.0 }
 0x12a   : > { %v1123_v55 = vpop.f32.mrf.mxu2  ;;  %v1010_v57 = vpop.f32.mrf.mxu0 }
 0x12b   : > { %v1124_v56 = vadd.f32 %v1123_v55, %v1066_v3  ;;  %v1181_v12 = vpop.f32.mrf.mxu3  ;;  %v1011_v15 = vadd.f32 %v1010_v57, %v3503_v7  ;;  %v1068_v16 = vpop.f32.mrf.mxu1  ;;  %v3681_v55 = vperm.slane %v3500_v6, 1 }
 0x12d   : > { %v1182_v30 = vadd.f32 %v1181_v12, %v1124_v56  ;;  %v1069_v32 = vadd.f32 %v1068_v16, %v1011_v15  ;;  %1231 = vmatmul.bf16.gmra.mxu0 %v3441_v22 }
 0x12e   : > { %1289 = vmatmul.bf16.gmra.mxu1 %v3443_v23  ;;  %v2793_v23 = vld [vmem:[%s3852_s3] sm:$0xff] }
 0x12f   : > { %v1455_v38 = vmax.f32 %v1182_v30, 0.0  ;;  %1347 = vmatmul.bf16.gmra.mxu2 %v3445_v24  ;;  %1622 = vmatpush.bf16.msra.mxu0 %v2793_v23 }
 0x130   : > { %1405 = vmatmul.bf16.gmra.mxu3 %v3447_v29 }
 0x131   : > { %v3652_v43 = vpack.c.bf16 %v1455_v38, %v1453_v42 }
 0x132   : > { %v1126_v46 = vpop.f32.mrf.mxu2  ;;  %v1012_v48 = vpop.f32.mrf.mxu0 }
 0x133   : > { %v1127_v44 = vadd.f32 %v1126_v46, %v1069_v32  ;;  %v1184_v25 = vpop.f32.mrf.mxu3  ;;  %v1013_v59 = vadd.f32 %v1012_v48, %v3503_v7  ;;  %v1070_v63 = vpop.f32.mrf.mxu1 }
 0x135   : > { %v1185_v26 = vadd.f32 %v1184_v25, %v1127_v44  ;;  %v1071_v27 = vadd.f32 %v1070_v63, %v1013_v59 }
 0x137   : > { %v1457_v9 = vmax.f32 %v1185_v26, 0.0 }
 0x13a   : > { %v1128_v22 = vpop.f32.mrf.mxu2  ;;  %v1015_v4 = vpop.f32.mrf.mxu0 }
 0x13b   : > { %v1129_v28 = vadd.f32 %v1128_v22, %v1071_v27  ;;  %v1186_v45 = vpop.f32.mrf.mxu3  ;;  %v1016_v24 = vadd.f32 %v1015_v4, %v3503_v7  ;;  %v1073_v29 = vpop.f32.mrf.mxu1  ;;  %v2816_v7 = vld [vmem:[%s3854_s5 + $0x38] sm:$0xff] }
 0x13c   : > { %1828 = vmatpush.bf16.msra.mxu2 %v2816_v7 }
 0x13d   : > { %v1187_v5 = vadd.f32 %v1186_v45, %v1129_v28  ;;  %v1074_v8 = vadd.f32 %v1073_v29, %v1016_v24  ;;  %1236 = vmatmul.bf16.gmra.mxu0 %v3473_v49 }
 0x13e   : > { %1294 = vmatmul.bf16.gmra.mxu1 %v3475_v50 }
 0x13f   : > { %v1459_v18 = vmax.f32 %v1187_v5, 0.0  ;;  %1352 = vmatmul.bf16.gmra.mxu2 %v3477_v58 }
 0x140   : > { %1410 = vmatmul.bf16.gmra.mxu3 %v3485_v61  ;;  %1829 = vmatpush.bf16.msra.mxu2 %v2815_v52 }
 0x141   : > { %v3669_v0 = vpack.c.bf16 %v1459_v18, %v1457_v9  ;;  %v2813_v18 = vld [vmem:[%s3854_s5 + $0x20] sm:$0xff] }
 0x142   : > { %v1131_v13 = vpop.f32.mrf.mxu2  ;;  %v1017_v1 = vpop.f32.mrf.mxu0 }
 0x143   : > { %v1132_v49 = vadd.f32 %v1131_v13, %v1074_v8  ;;  %v1189_v2 = vpop.f32.mrf.mxu3  ;;  %v1075_v50 = vpop.f32.mrf.mxu1 }
 0x145   : > { %v3671_v58 = vadd.f32 %v1189_v2, %v1132_v49 }
 0x14a   : > { %v1133_v61 = vpop.f32.mrf.mxu2  ;;  %v1202_v21 = vpop.f32.mrf.mxu0 }
 0x14b   : > { %v1191_v20 = vpop.f32.mrf.mxu3  ;;  %v1260_v47 = vpop.f32.mrf.mxu1  ;;  %v1203_v12 = vadd.f32 %v1202_v21, %v3681_v55 }
 0x14d   : > { %1241 = vmatmul.bf16.gmra.mxu0 %v3519_v31 }
 0x14e   : > { %1299 = vmatmul.bf16.gmra.mxu1 %v3521_v33 }
 0x14f   : > { %1357 = vmatmul.bf16.gmra.mxu2 %v3523_v34 }
 0x150   : > { %1415 = vmatmul.bf16.gmra.mxu3 %v3532_v39  ;;  %v1261_v39 = vadd.f32 %v1260_v47, %v1203_v12 }
 0x152   : > { %v1318_v53 = vpop.f32.mrf.mxu2  ;;  %v1204_v3 = vpop.f32.mrf.mxu0 }
 0x153   : > { %v1376_v51 = vpop.f32.mrf.mxu3  ;;  %v1262_v54 = vpop.f32.mrf.mxu1  ;;  %v1205_v31 = vadd.f32 %v1204_v3, %v3681_v55  ;;  %v1319_v30 = vadd.f32 %v1318_v53, %v1261_v39 }
 0x155   : > { %v1263_v15 = vadd.f32 %v1262_v54, %v1205_v31  ;;  %v1377_v44 = vadd.f32 %v1376_v51, %v1319_v30 }
 0x157   : > { %v1426_v25 = vmax.f32 %v1377_v44, 0.0 }
 0x15a   : > { %v1320_v56 = vpop.f32.mrf.mxu2  ;;  %v1207_v33 = vpop.f32.mrf.mxu0 }
 0x15b   : > { %v1378_v57 = vpop.f32.mrf.mxu3  ;;  %v1265_v34 = vpop.f32.mrf.mxu1  ;;  %v1321_v6 = vadd.f32 %v1320_v56, %v1263_v15  ;;  %v1208_v26 = vadd.f32 %v1207_v33, %v3681_v55 }
 0x15d   : > { %1246 = vmatmul.bf16.gmra.mxu0 %v3547_v17  ;;  %v1379_v46 = vadd.f32 %v1378_v57, %v1321_v6  ;;  %v2814_v17 = vld [vmem:[%s3854_s5 + $0x28] sm:$0xff]  ;;  %v1266_v28 = vadd.f32 %v1265_v34, %v1208_v26 }
 0x15e   : > { %1304 = vmatmul.bf16.gmra.mxu1 %v3549_v36  ;;  %1830 = vmatpush.bf16.msra.mxu2 %v2814_v17 }
 0x15f   : > { %1362 = vmatmul.bf16.gmra.mxu2 %v3551_v37  ;;  %v1428_v48 = vmax.f32 %v1379_v46, 0.0 }
 0x160   : > { %1420 = vmatmul.bf16.gmra.mxu3 %v3554_v41 }
 0x161   : > { %v1464_v27 = vpack.c.bf16 %v1428_v48, %v1426_v25 }
 0x162   : > { %v1323_v16 = vpop.f32.mrf.mxu2  ;;  %v1209_v32 = vpop.f32.mrf.mxu0  ;;  %1831 = vmatpush.bf16.msra.mxu2 %v2813_v18 }
 0x163   : > { %v1381_v42 = vpop.f32.mrf.mxu3  ;;  %v1267_v38 = vpop.f32.mrf.mxu1  ;;  %v1210_v37 = vadd.f32 %v1209_v32, %v3681_v55  ;;  %v1324_v23 = vadd.f32 %v1323_v16, %v1266_v28  ;;  %v2812_v32 = vld [vmem:[%s3854_s5 + $0x18] sm:$0xff] }
 0x165   : > { %v1268_v22 = vadd.f32 %v1267_v38, %v1210_v37  ;;  %v1382_v9 = vadd.f32 %v1381_v42, %v1324_v23  ;;  %v2811_v23 = vld [vmem:[%s3854_s5 + $0x10] sm:$0xff] }
 0x166   : > { %1832 = vmatpush.bf16.msra.mxu2 %v2812_v32 }
 0x167   : > { %v1430_v13 = vmax.f32 %v1382_v9, 0.0 }
 0x16a   : > { %v1325_v36 = vpop.f32.mrf.mxu2  ;;  %v1212_v41 = vpop.f32.mrf.mxu0  ;;  %1833 = vmatpush.bf16.msra.mxu2 %v2811_v23 }
 0x16b   : > { %v1383_v59 = vpop.f32.mrf.mxu3  ;;  %v1270_v63 = vpop.f32.mrf.mxu1  ;;  %v1326_v4 = vadd.f32 %v1325_v36, %v1268_v22  ;;  %v1213_v50 = vadd.f32 %v1212_v41, %v3681_v55 }
 0x16d   : > { %1623 = vmatmul.bf16.vlgmr.msra.gmra.mxu0 %v3560_v62  ;;  %v1384_v8 = vadd.f32 %v1383_v59, %v1326_v4  ;;  %v1271_v21 = vadd.f32 %v1270_v63, %v1213_v50 }
 0x16e   : > { %1681 = vmatmul.bf16.vlgmr.msra.gmra.mxu1 %v1464_v27 }
 0x16f   : > { %v1432_v11 = vmax.f32 %v1384_v8, 0.0 }
 0x171   : > { %v1466_v61 = vpack.c.bf16 %v1432_v11, %v1430_v13 }
 0x172   : > { %v1328_v45 = vpop.f32.mrf.mxu2  ;;  %v1214_v24 = vpop.f32.mrf.mxu0 }
 0x173   : > { %v1386_v29 = vpop.f32.mrf.mxu3  ;;  %v1272_v5 = vpop.f32.mrf.mxu1  ;;  %v1215_v62 = vadd.f32 %v1214_v24, %v3681_v55  ;;  %v1329_v53 = vadd.f32 %v1328_v45, %v1271_v21 }
 0x175   : > { %v1273_v20 = vadd.f32 %v1272_v5, %v1215_v62  ;;  %v1387_v31 = vadd.f32 %v1386_v29, %v1329_v53 }
 0x177   : > { %v1434_v34 = vmax.f32 %v1387_v31, 0.0 }
 0x17a   : > { %v1330_v7 = vpop.f32.mrf.mxu2  ;;  %v1217_v49 = vpop.f32.mrf.mxu0 }
 0x17b   : > { %v1388_v1 = vpop.f32.mrf.mxu3  ;;  %v1275_v2 = vpop.f32.mrf.mxu1  ;;  %v1331_v47 = vadd.f32 %v1330_v7, %v1273_v20 }
 0x17d   : > { %1628 = vmatmul.bf16.gmra.mxu0 %v3574_v60  ;;  %v1389_v56 = vadd.f32 %v1388_v1, %v1331_v47  ;;  %v1218_v60 = vadd.f32 %v1217_v49, %v3681_v55 }
 0x17e   : > { %1686 = vmatmul.bf16.gmra.mxu1 %v1466_v61 }
 0x17f   : > { %v1436_v33 = vmax.f32 %v1389_v56, 0.0  ;;  %v1276_v42 = vadd.f32 %v1275_v2, %v1218_v60 }
 0x181   : > { %v1468_v16 = vpack.c.bf16 %v1436_v33, %v1434_v34  ;;  %v2810_v34 = vld [vmem:[%s3854_s5 + $0x8] sm:$0xff] }
 0x182   : > { %v1333_v52 = vpop.f32.mrf.mxu2  ;;  %v1219_v3 = vpop.f32.mrf.mxu0  ;;  %1834 = vmatpush.bf16.msra.mxu2 %v2810_v34 }
 0x183   : > { %v1391_v51 = vpop.f32.mrf.mxu3  ;;  %v1277_v54 = vpop.f32.mrf.mxu1  ;;  %v1220_v12 = vadd.f32 %v1219_v3, %v3681_v55  ;;  %v1334_v44 = vadd.f32 %v1333_v52, %v1276_v42 }
 0x185   : > { %v1278_v30 = vadd.f32 %v1277_v54, %v1220_v12  ;;  %v1392_v37 = vadd.f32 %v1391_v51, %v1334_v44 }
 0x187   : > { %v1438_v63 = vmax.f32 %v1392_v37, 0.0 }
 0x18a   : > { %v1335_v57 = vpop.f32.mrf.mxu2  ;;  %v1222_v15 = vpop.f32.mrf.mxu0 }
 0x18b   : > { %v1393_v39 = vpop.f32.mrf.mxu3  ;;  %v1280_v6 = vpop.f32.mrf.mxu1  ;;  %v1336_v38 = vadd.f32 %v1335_v57, %v1278_v30  ;;  %v1223_v28 = vadd.f32 %v1222_v15, %v3681_v55 }
 0x18d   : > { %1633 = vmatmul.bf16.gmra.mxu0 %v3588_v40  ;;  %v1394_v25 = vadd.f32 %v1393_v39, %v1336_v38  ;;  %v1281_v24 = vadd.f32 %v1280_v6, %v1223_v28 }
 0x18e   : > { %1691 = vmatmul.bf16.gmra.mxu1 %v1468_v16 }
 0x18f   : > { %v1440_v41 = vmax.f32 %v1394_v25, 0.0 }
 0x191   : > { %v1470_v4 = vpack.c.bf16 %v1440_v41, %v1438_v63  ;;  %v2809_v63 = vld [vmem:[%s3854_s5] sm:$0xff] }
 0x192   : > { %v1338_v46 = vpop.f32.mrf.mxu2  ;;  %v1224_v17 = vpop.f32.mrf.mxu0  ;;  %1835 = vmatpush.bf16.msra.mxu2 %v2809_v63 }
 0x193   : > { %v1396_v48 = vpop.f32.mrf.mxu3  ;;  %v1282_v36 = vpop.f32.mrf.mxu1  ;;  %v1225_v40 = vadd.f32 %v1224_v17, %v3681_v55  ;;  %v1339_v8 = vadd.f32 %v1338_v46, %v1281_v24  ;;  %v2824_v24 = vld [vmem:[%s3856_s7 + $0x38] sm:$0xff] }
 0x194   : > { %1983 = vmatpush.bf16.msra.mxu3 %v2824_v24 }
 0x195   : > { %v1283_v45 = vadd.f32 %v1282_v36, %v1225_v40  ;;  %v1397_v13 = vadd.f32 %v1396_v48, %v1339_v8 }
 0x197   : > { %v1442_v1 = vmax.f32 %v1397_v13, 0.0 }
 0x19a   : > { %v1340_v59 = vpop.f32.mrf.mxu2  ;;  %v1227_v26 = vpop.f32.mrf.mxu0 }
 0x19b   : > { %v1398_v27 = vpop.f32.mrf.mxu3  ;;  %v1285_v22 = vpop.f32.mrf.mxu1  ;;  %v1341_v29 = vadd.f32 %v1340_v59, %v1283_v45  ;;  %v1228_v20 = vadd.f32 %v1227_v26, %v3681_v55 }
 0x19d   : > { %1638 = vmatmul.bf16.gmra.mxu0 %v3602_v14  ;;  %v1399_v7 = vadd.f32 %v1398_v27, %v1341_v29  ;;  %v1286_v52 = vadd.f32 %v1285_v22, %v1228_v20 }
 0x19e   : > { %1696 = vmatmul.bf16.gmra.mxu1 %v1470_v4 }
 0x19f   : > { %v1444_v62 = vmax.f32 %v1399_v7, 0.0 }
 0x1a1   : > { %v1472_v21 = vpack.c.bf16 %v1444_v62, %v1442_v1 }
 0x1a2   : > { %v1343_v5 = vpop.f32.mrf.mxu2  ;;  %v1229_v9 = vpop.f32.mrf.mxu0 }
 0x1a3   : > { %v1401_v18 = vpop.f32.mrf.mxu3  ;;  %v1287_v11 = vpop.f32.mrf.mxu1  ;;  %v1230_v14 = vadd.f32 %v1229_v9, %v3681_v55  ;;  %v1344_v51 = vadd.f32 %v1343_v5, %v1286_v52  ;;  %v2823_v52 = vld [vmem:[%s3856_s7 + $0x30] sm:$0xff] }
 0x1a4   : > { %1984 = vmatpush.bf16.msra.mxu3 %v2823_v52 }
 0x1a5   : > { %v1288_v47 = vadd.f32 %v1287_v11, %v1230_v14  ;;  %v1402_v57 = vadd.f32 %v1401_v18, %v1344_v51 }
 0x1a7   : > { %v1446_v39 = vmax.f32 %v1402_v57, 0.0 }
 0x1aa   : > { %v1345_v49 = vpop.f32.mrf.mxu2  ;;  %v1232_v2 = vpop.f32.mrf.mxu0 }
 0x1ab   : > { %v1403_v50 = vpop.f32.mrf.mxu3  ;;  %v1290_v61 = vpop.f32.mrf.mxu1  ;;  %v1346_v53 = vadd.f32 %v1345_v49, %v1288_v47  ;;  %v1233_v30 = vadd.f32 %v1232_v2, %v3681_v55 }
 0x1ad   : > { %1643 = vmatmul.bf16.gmra.mxu0 %v3616_v10  ;;  %v1404_v33 = vadd.f32 %v1403_v50, %v1346_v53  ;;  %v1291_v38 = vadd.f32 %v1290_v61, %v1233_v30 }
 0x1ae   : > { %1701 = vmatmul.bf16.gmra.mxu1 %v1472_v21 }
 0x1af   : > { %v1448_v12 = vmax.f32 %v1404_v33, 0.0 }
 0x1b1   : > { %v1474_v32 = vpack.c.bf16 %v1448_v12, %v1446_v39 }
 0x1b2   : > { %v1348_v3 = vpop.f32.mrf.mxu2  ;;  %v1234_v54 = vpop.f32.mrf.mxu0 }
 0x1b3   : > { %v1406_v56 = vpop.f32.mrf.mxu3  ;;  %v1292_v31 = vpop.f32.mrf.mxu1  ;;  %v1235_v10 = vadd.f32 %v1234_v54, %v3681_v55  ;;  %v1349_v17 = vadd.f32 %v1348_v3, %v1291_v38 }
 0x1b5   : > { %v1293_v42 = vadd.f32 %v1292_v31, %v1235_v10  ;;  %v1407_v41 = vadd.f32 %v1406_v56, %v1349_v17 }
 0x1b7   : > { %v1450_v26 = vmax.f32 %v1407_v41, 0.0 }
 0x1ba   : > { %v1350_v15 = vpop.f32.mrf.mxu2  ;;  %v1237_v6 = vpop.f32.mrf.mxu0 }
 0x1bb   : > { %v1408_v60 = vpop.f32.mrf.mxu3  ;;  %v1295_v16 = vpop.f32.mrf.mxu1  ;;  %v1351_v46 = vadd.f32 %v1350_v15, %v1293_v42  ;;  %v1238_v4 = vadd.f32 %v1237_v6, %v3681_v55 }
 0x1bd   : > { %1648 = vmatmul.bf16.gmra.mxu0 %v3624_v35  ;;  %v1409_v37 = vadd.f32 %v1408_v60, %v1351_v46  ;;  %v1296_v29 = vadd.f32 %v1295_v16, %v1238_v4  ;;  %v3741_v60 = vld [vmem:[%s3853_s4] ss:$0 sm:$0xff] }
 0x1be   : > { %1706 = vmatmul.bf16.gmra.mxu1 %v1474_v32 }
 0x1bf   : > { %v1452_v59 = vmax.f32 %v1409_v37, 0.0 }
 0x1c1   : > { %v1476_v45 = vpack.c.bf16 %v1452_v59, %v1450_v26 }
 0x1c2   : > { %v1353_v44 = vpop.f32.mrf.mxu2  ;;  %v1239_v48 = vpop.f32.mrf.mxu0 }
 0x1c3   : > { %v1411_v36 = vpop.f32.mrf.mxu3  ;;  %v1297_v25 = vpop.f32.mrf.mxu1  ;;  %v1240_v35 = vadd.f32 %v1239_v48, %v3681_v55  ;;  %v1354_v9 = vadd.f32 %v1353_v44, %v1296_v29 }
 0x1c5   : > { %v1298_v23 = vadd.f32 %v1297_v25, %v1240_v35  ;;  %v1412_v62 = vadd.f32 %v1411_v36, %v1354_v9  ;;  %v1461_v25 = vmax.f32 %v3671_v58, 0.0 }
 0x1c7   : > { %v1454_v14 = vmax.f32 %v1412_v62, 0.0  ;;  %v1481_v26 = vpack.c.bf16 %v1461_v25, %v1461_v25 }
 0x1ca   : > { %v1355_v40 = vpop.f32.mrf.mxu2  ;;  %v1242_v27 = vpop.f32.mrf.mxu0 }
 0x1cb   : > { %v1413_v22 = vpop.f32.mrf.mxu3  ;;  %v1300_v28 = vpop.f32.mrf.mxu1  ;;  %v1356_v5 = vadd.f32 %v1355_v40, %v1298_v23  ;;  %v1243_v20 = vadd.f32 %v1242_v27, %v3681_v55 }
 0x1cd   : > { %1653 = vmatmul.bf16.gmra.mxu0 %v3638_v19  ;;  %v1414_v13 = vadd.f32 %v1413_v22, %v1356_v5  ;;  %v1301_v53 = vadd.f32 %v1300_v28, %v1243_v20 }
 0x1ce   : > { %1711 = vmatmul.bf16.gmra.mxu1 %v1476_v45 }
 0x1cf   : > { %v1456_v49 = vmax.f32 %v1414_v13, 0.0 }
 0x1d1   : > { %v1478_v21 = vpack.c.bf16 %v1456_v49, %v1454_v14 }
 0x1d2   : > { %v1358_v8 = vpop.f32.mrf.mxu2  ;;  %v1244_v18 = vpop.f32.mrf.mxu0 }
 0x1d3   : > { %v1416_v11 = vpop.f32.mrf.mxu3  ;;  %v1302_v7 = vpop.f32.mrf.mxu1  ;;  %v1245_v19 = vadd.f32 %v1244_v18, %v3681_v55  ;;  %v1359_v54 = vadd.f32 %v1358_v8, %v1301_v53  ;;  %v2821_v8 = vld [vmem:[%s3856_s7 + $0x20] sm:$0xff] }
 0x1d5   : > { %v1303_v47 = vadd.f32 %v1302_v7, %v1245_v19  ;;  %v1417_v34 = vadd.f32 %v1416_v11, %v1359_v54 }
 0x1d7   : > { %v1458_v39 = vmax.f32 %v1417_v34, 0.0 }
 0x1da   : > { %v1360_v1 = vpop.f32.mrf.mxu2  ;;  %v1247_v2 = vpop.f32.mrf.mxu0 }
 0x1db   : > { %v1418_v50 = vpop.f32.mrf.mxu3  ;;  %v1305_v61 = vpop.f32.mrf.mxu1  ;;  %v1361_v3 = vadd.f32 %v1360_v1, %v1303_v47 }
 0x1dd   : > { %1658 = vmatmul.bf16.gmra.mxu0 %v3652_v43  ;;  %v1419_v57 = vadd.f32 %v1418_v50, %v1361_v3  ;;  %v1248_v43 = vadd.f32 %v1247_v2, %v3681_v55 }
 0x1de   : > { %1716 = vmatmul.bf16.gmra.mxu1 %v1478_v21  ;;  %v2820_v21 = vld [vmem:[%s3856_s7 + $0x18] sm:$0xff] }
 0x1df   : > { %v1460_v12 = vmax.f32 %v1419_v57, 0.0  ;;  %v1306_v32 = vadd.f32 %v1305_v61, %v1248_v43 }
 0x1e1   : > { %v1480_v30 = vpack.c.bf16 %v1460_v12, %v1458_v39  ;;  %v2819_v12 = vld [vmem:[%s3856_s7 + $0x10] sm:$0xff] }
 0x1e2   : > { %v1363_v51 = vpop.f32.mrf.mxu2  ;;  %v1249_v56 = vpop.f32.mrf.mxu0 }
 0x1e3   : > { %v1421_v31 = vpop.f32.mrf.mxu3  ;;  %v1307_v33 = vpop.f32.mrf.mxu1  ;;  %v1364_v38 = vadd.f32 %v1363_v51, %v1306_v32 }
 0x1e5   : > { %v1422_v48 = vadd.f32 %v1421_v31, %v1364_v38 }
 0x1e7   : > { %v1462_v59 = vmax.f32 %v1422_v48, 0.0 }
 0x1e9   : > { %v1482_v27 = vpack.c.bf16 %v1462_v59, %v1462_v59  ;;  %v2818_v59 = vld [vmem:[%s3856_s7 + $0x8] sm:$0xff] }
 0x1ea   : > { %v1365_v15 = vpop.f32.mrf.mxu2  ;;  %v1624_v10 = vpop.f32.mrf.mxu0 }
 0x1eb   : > { %v1423_v6 = vpop.f32.mrf.mxu3  ;;  %v1682_v16 = vpop.f32.mrf.mxu1  ;;  %v1625_v42 = vadd.f32 %v3741_v60, %v1624_v10 }
 0x1ed   : > { %1663 = vmatmul.bf16.gmra.mxu0 %v3669_v0  ;;  %v1683_v44 = vadd.f32 %v1682_v16, %v1625_v42  ;;  %v2822_v0 = vld [vmem:[%s3856_s7 + $0x28] sm:$0xff] }
 0x1ee   : > { %1721 = vmatmul.bf16.gmra.mxu1 %v1480_v30  ;;  %1985 = vmatpush.bf16.msra.mxu3 %v2822_v0 }
 0x1ef   : > { %v1731_v37 = vmax.f32 %v1683_v44, 0.0 }
 0x1f2   : > { %v1626_v46 = vpop.f32.mrf.mxu0  ;;  %1986 = vmatpush.bf16.msra.mxu3 %v2821_v8 }
 0x1f3   : > { %v1627_v55 = vadd.f32 %v3741_v60, %v1626_v46  ;;  %v1684_v17 = vpop.f32.mrf.mxu1 }
 0x1f5   : > { %v1685_v36 = vadd.f32 %v1684_v17, %v1627_v55 }
 0x1f6   : > { %1987 = vmatpush.bf16.msra.mxu3 %v2820_v21 }
 0x1f7   : > { %v1732_v41 = vmax.f32 %v1685_v36, 0.0 }
 0x1f9   : > { %v1750_v63 = vpack.c.bf16 %v1732_v41, %v1731_v37 }
 0x1fa   : > { %v1629_v40 = vpop.f32.mrf.mxu0  ;;  %1988 = vmatpush.bf16.msra.mxu3 %v2819_v12 }
 0x1fb   : > { %v1687_v35 = vpop.f32.mrf.mxu1  ;;  %1836 = vmatmul.bf16.vlgmr.msra.gmra.mxu2 %v1750_v63  ;;  %v1630_v22 = vadd.f32 %v3741_v60, %v1629_v40 }
 0x1fd   : > { %1668 = vmatmul.bf16.gmra.mxu0 %v1481_v26  ;;  %v1688_v58 = vadd.f32 %v1687_v35, %v1630_v22 }
 0x1fe   : > { %1726 = vmatmul.bf16.gmra.mxu1 %v1482_v27  ;;  %1989 = vmatpush.bf16.msra.mxu3 %v2818_v59 }
 0x1ff   : > { %v1733_v24 = vmax.f32 %v1688_v58, 0.0 }
 0x202   : > { %v1631_v28 = vpop.f32.mrf.mxu0 }
 0x203   : > { %v1632_v4 = vadd.f32 %v3741_v60, %v1631_v28  ;;  %v1689_v45 = vpop.f32.mrf.mxu1 }
 0x205   : > { %v1690_v23 = vadd.f32 %v1689_v45, %v1632_v4 }
 0x207   : > { %v1734_v29 = vmax.f32 %v1690_v23, 0.0  ;;  %v2817_v23 = vld [vmem:[%s3856_s7] sm:$0xff] }
 0x208   : > { %1990 = vmatpush.bf16.msra.mxu3 %v2817_v23 }
 0x209   : > { %v1751_v5 = vpack.c.bf16 %v1734_v29, %v1733_v24 }
 0x20a   : > { %v1634_v9 = vpop.f32.mrf.mxu0 }
 0x20b   : > { %v1692_v18 = vpop.f32.mrf.mxu1  ;;  %1841 = vmatmul.bf16.gmra.mxu2 %v1751_v5  ;;  %v1635_v11 = vadd.f32 %v3741_v60, %v1634_v9 }
 0x20d   : > { %v1693_v13 = vadd.f32 %v1692_v18, %v1635_v11 }
 0x20f   : > { %v1735_v14 = vmax.f32 %v1693_v13, 0.0 }
 0x212   : > { %v1636_v7 = vpop.f32.mrf.mxu0 }
 0x213   : > { %v1637_v62 = vadd.f32 %v3741_v60, %v1636_v7  ;;  %v1694_v49 = vpop.f32.mrf.mxu1 }
 0x215   : > { %v1695_v1 = vadd.f32 %v1694_v49, %v1637_v62 }
 0x217   : > { %v1736_v19 = vmax.f32 %v1695_v1, 0.0 }
 0x219   : > { %v1752_v2 = vpack.c.bf16 %v1736_v19, %v1735_v14 }
 0x21a   : > { %v1639_v50 = vpop.f32.mrf.mxu0 }
 0x21b   : > { %v1697_v61 = vpop.f32.mrf.mxu1  ;;  %1846 = vmatmul.bf16.gmra.mxu2 %v1752_v2  ;;  %v1640_v20 = vadd.f32 %v3741_v60, %v1639_v50 }
 0x21d   : > { %v1698_v52 = vadd.f32 %v1697_v61, %v1640_v20 }
 0x21f   : > { %v1737_v54 = vmax.f32 %v1698_v52, 0.0 }
 0x222   : > { %v1641_v47 = vpop.f32.mrf.mxu0 }
 0x223   : > { %v1642_v53 = vadd.f32 %v3741_v60, %v1641_v47  ;;  %v1699_v3 = vpop.f32.mrf.mxu1 }
 0x225   : > { %v1700_v51 = vadd.f32 %v1699_v3, %v1642_v53 }
 0x227   : > { %v1738_v56 = vmax.f32 %v1700_v51, 0.0 }
 0x229   : > { %v1753_v31 = vpack.c.bf16 %v1738_v56, %v1737_v54 }
 0x22a   : > { %v1644_v33 = vpop.f32.mrf.mxu0 }
 0x22b   : > { %v1702_v57 = vpop.f32.mrf.mxu1  ;;  %1851 = vmatmul.bf16.gmra.mxu2 %v1753_v31  ;;  %v1645_v34 = vadd.f32 %v3741_v60, %v1644_v33  ;;  %v3785_v33 = vld [vmem:[%s3855_s6] ss:$0 sm:$0xff] }
 0x22d   : > { %v1703_v39 = vadd.f32 %v1702_v57, %v1645_v34 }
 0x22f   : > { %v1739_v16 = vmax.f32 %v1703_v39, 0.0 }
 0x232   : > { %v1646_v15 = vpop.f32.mrf.mxu0 }
 0x233   : > { %v1647_v43 = vadd.f32 %v3741_v60, %v1646_v15  ;;  %v1704_v10 = vpop.f32.mrf.mxu1 }
 0x235   : > { %v1705_v6 = vadd.f32 %v1704_v10, %v1647_v43 }
 0x237   : > { %v1740_v30 = vmax.f32 %v1705_v6, 0.0 }
 0x239   : > { %v1754_v32 = vpack.c.bf16 %v1740_v30, %v1739_v16 }
 0x23a   : > { %v1649_v42 = vpop.f32.mrf.mxu0 }
 0x23b   : > { %v1707_v38 = vpop.f32.mrf.mxu1  ;;  %1856 = vmatmul.bf16.gmra.mxu2 %v1754_v32  ;;  %v1650_v46 = vadd.f32 %v3741_v60, %v1649_v42 }
 0x23d   : > { %v1708_v55 = vadd.f32 %v1707_v38, %v1650_v46 }
 0x23f   : > { %v1741_v25 = vmax.f32 %v1708_v55, 0.0 }
 0x242   : > { %v1651_v44 = vpop.f32.mrf.mxu0 }
 0x243   : > { %v1652_v17 = vadd.f32 %v3741_v60, %v1651_v44  ;;  %v1709_v48 = vpop.f32.mrf.mxu1 }
 0x245   : > { %v1710_v36 = vadd.f32 %v1709_v48, %v1652_v17 }
 0x247   : > { %v1742_v37 = vmax.f32 %v1710_v36, 0.0 }
 0x249   : > { %v1755_v41 = vpack.c.bf16 %v1742_v37, %v1741_v25 }
 0x24a   : > { %v1654_v63 = vpop.f32.mrf.mxu0 }
 0x24b   : > { %v1712_v0 = vpop.f32.mrf.mxu1  ;;  %1861 = vmatmul.bf16.gmra.mxu2 %v1755_v41  ;;  %v1655_v40 = vadd.f32 %v3741_v60, %v1654_v63 }
 0x24d   : > { %v1713_v35 = vadd.f32 %v1712_v0, %v1655_v40 }
 0x24f   : > { %v1743_v58 = vmax.f32 %v1713_v35, 0.0 }
 0x252   : > { %v1656_v26 = vpop.f32.mrf.mxu0 }
 0x253   : > { %v1657_v27 = vadd.f32 %v3741_v60, %v1656_v26  ;;  %v1714_v22 = vpop.f32.mrf.mxu1 }
 0x255   : > { %v1715_v28 = vadd.f32 %v1714_v22, %v1657_v27 }
 0x257   : > { %v1744_v4 = vmax.f32 %v1715_v28, 0.0 }
 0x259   : > { %v1756_v45 = vpack.c.bf16 %v1744_v4, %v1743_v58 }
 0x25a   : > { %v1659_v24 = vpop.f32.mrf.mxu0 }
 0x25b   : > { %v1717_v29 = vpop.f32.mrf.mxu1  ;;  %1866 = vmatmul.bf16.gmra.mxu2 %v1756_v45  ;;  %v1660_v5 = vadd.f32 %v3741_v60, %v1659_v24 }
 0x25d   : > { %v1718_v9 = vadd.f32 %v1717_v29, %v1660_v5 }
 0x25f   : > { %v1745_v13 = vmax.f32 %v1718_v9, 0.0 }
 0x262   : > { %v1661_v8 = vpop.f32.mrf.mxu0 }
 0x263   : > { %v1662_v18 = vadd.f32 %v3741_v60, %v1661_v8  ;;  %v1719_v11 = vpop.f32.mrf.mxu1 }
 0x265   : > { %v1720_v7 = vadd.f32 %v1719_v11, %v1662_v18 }
 0x267   : > { %v1746_v62 = vmax.f32 %v1720_v7, 0.0 }
 0x269   : > { %v1757_v49 = vpack.c.bf16 %v1746_v62, %v1745_v13 }
 0x26a   : > { %v1664_v1 = vpop.f32.mrf.mxu0 }
 0x26b   : > { %v1722_v14 = vpop.f32.mrf.mxu1  ;;  %1871 = vmatmul.bf16.gmra.mxu2 %v1757_v49  ;;  %v1665_v19 = vadd.f32 %v3741_v60, %v1664_v1 }
 0x26d   : > { %v1723_v50 = vadd.f32 %v1722_v14, %v1665_v19 }
 0x26f   : > { %v1747_v47 = vmax.f32 %v1723_v50, 0.0 }
 0x272   : > { %v1666_v2 = vpop.f32.mrf.mxu0 }
 0x273   : > { %v1667_v61 = vadd.f32 %v3741_v60, %v1666_v2  ;;  %v1724_v20 = vpop.f32.mrf.mxu1 }
 0x275   : > { %v1725_v21 = vadd.f32 %v1724_v20, %v1667_v61 }
 0x277   : > { %v1748_v52 = vmax.f32 %v1725_v21, 0.0 }
 0x279   : > { %v1758_v53 = vpack.c.bf16 %v1748_v52, %v1747_v47 }
 0x27a   : > { %v1669_v3 = vpop.f32.mrf.mxu0 }
 0x27b   : > { %v1727_v51 = vpop.f32.mrf.mxu1  ;;  %1876 = vmatmul.bf16.gmra.mxu2 %v1758_v53  ;;  %v1670_v54 = vadd.f32 %v3741_v60, %v1669_v3 }
 0x27d   : > { %v1728_v31 = vadd.f32 %v1727_v51, %v1670_v54 }
 0x27e   : > { %v1837_v56 = vpop.f32.mrf.mxu2 }
 0x27f   : > { %v1749_v12 = vmax.f32 %v1728_v31, 0.0  ;;  %v1838_v15 = vadd.f32 %v3785_v33, %v1837_v56 }
 0x281   : > { %v1759_v10 = vpack.c.bf16 %v1749_v12, %v1749_v12  ;;  %v1886_v6 = vmax.f32 %v1838_v15, 0.0 }
 0x282   : > { %v1671_v57 = vpop.f32.mrf.mxu0 }
 0x283   : > { %v1729_v34 = vpop.f32.mrf.mxu1 }
 0x286   : > { %v1839_v39 = vpop.f32.mrf.mxu2 }
 0x287   : > { %v1840_v43 = vadd.f32 %v3785_v33, %v1839_v39 }
 0x289   : > { %v1887_v16 = vmax.f32 %v1840_v43, 0.0 }
 0x28b   : > { %v1905_v30 = vpack.c.bf16 %v1887_v16, %v1886_v6  ;;  %1881 = vmatmul.bf16.gmra.mxu2 %v1759_v10  ;;  %v3809_v10 = vld [vmem:[%s3857_s8] ss:$0 sm:$0xff] }
 0x28d   : > { %1991 = vmatmul.bf16.vlgmr.msra.gmra.mxu3 %v1905_v30 }
 0x28e   : > { %v1842_v60 = vpop.f32.mrf.mxu2 }
 0x28f   : > { %v1843_v32 = vadd.f32 %v3785_v33, %v1842_v60 }
 0x291   : > { %v1888_v46 = vmax.f32 %v1843_v32, 0.0 }
 0x296   : > { %v1844_v42 = vpop.f32.mrf.mxu2 }
 0x297   : > { %v1845_v38 = vadd.f32 %v3785_v33, %v1844_v42 }
 0x299   : > { %v1889_v44 = vmax.f32 %v1845_v38, 0.0 }
 0x29b   : > { %v1906_v55 = vpack.c.bf16 %v1889_v44, %v1888_v46 }
 0x29d   : > { %1996 = vmatmul.bf16.gmra.mxu3 %v1906_v55 }
 0x29e   : > { %v1847_v17 = vpop.f32.mrf.mxu2 }
 0x29f   : > { %v1848_v48 = vadd.f32 %v3785_v33, %v1847_v17 }
 0x2a1   : > { %v1890_v37 = vmax.f32 %v1848_v48, 0.0 }
 0x2a6   : > { %v1849_v36 = vpop.f32.mrf.mxu2 }
 0x2a7   : > { %v1850_v25 = vadd.f32 %v3785_v33, %v1849_v36 }
 0x2a9   : > { %v1891_v41 = vmax.f32 %v1850_v25, 0.0 }
 0x2ab   : > { %v1907_v59 = vpack.c.bf16 %v1891_v41, %v1890_v37 }
 0x2ad   : > { %2001 = vmatmul.bf16.gmra.mxu3 %v1907_v59 }
 0x2ae   : > { %v1852_v63 = vpop.f32.mrf.mxu2 }
 0x2af   : > { %v1853_v0 = vadd.f32 %v3785_v33, %v1852_v63 }
 0x2b1   : > { %v1892_v35 = vmax.f32 %v1853_v0, 0.0 }
 0x2b6   : > { %v1854_v40 = vpop.f32.mrf.mxu2 }
 0x2b7   : > { %v1855_v26 = vadd.f32 %v3785_v33, %v1854_v40 }
 0x2b9   : > { %v1893_v27 = vmax.f32 %v1855_v26, 0.0 }
 0x2bb   : > { %v1908_v22 = vpack.c.bf16 %v1893_v27, %v1892_v35 }
 0x2bd   : > { %2006 = vmatmul.bf16.gmra.mxu3 %v1908_v22 }
 0x2be   : > { %v1857_v28 = vpop.f32.mrf.mxu2 }
 0x2bf   : > { %v1858_v58 = vadd.f32 %v3785_v33, %v1857_v28 }
 0x2c1   : > { %v1894_v23 = vmax.f32 %v1858_v58, 0.0 }
 0x2c6   : > { %v1859_v4 = vpop.f32.mrf.mxu2 }
 0x2c7   : > { %v1860_v45 = vadd.f32 %v3785_v33, %v1859_v4 }
 0x2c9   : > { %v1895_v24 = vmax.f32 %v1860_v45, 0.0 }
 0x2cb   : > { %v1909_v29 = vpack.c.bf16 %v1895_v24, %v1894_v23 }
 0x2cd   : > { %2011 = vmatmul.bf16.gmra.mxu3 %v1909_v29 }
 0x2ce   : > { %v1862_v5 = vpop.f32.mrf.mxu2 }
 0x2cf   : > { %v1863_v8 = vadd.f32 %v3785_v33, %v1862_v5 }
 0x2d1   : > { %v1896_v11 = vmax.f32 %v1863_v8, 0.0 }
 0x2d6   : > { %v1864_v9 = vpop.f32.mrf.mxu2 }
 0x2d7   : > { %v1865_v18 = vadd.f32 %v3785_v33, %v1864_v9 }
 0x2d9   : > { %v1897_v7 = vmax.f32 %v1865_v18, 0.0 }
 0x2db   : > { %v1910_v13 = vpack.c.bf16 %v1897_v7, %v1896_v11 }
 0x2dd   : > { %2016 = vmatmul.bf16.gmra.mxu3 %v1910_v13 }
 0x2de   : > { %v1867_v62 = vpop.f32.mrf.mxu2 }
 0x2df   : > { %v1868_v49 = vadd.f32 %v3785_v33, %v1867_v62 }
 0x2e1   : > { %v1898_v19 = vmax.f32 %v1868_v49, 0.0 }
 0x2e6   : > { %v1869_v1 = vpop.f32.mrf.mxu2 }
 0x2e7   : > { %v1870_v14 = vadd.f32 %v3785_v33, %v1869_v1 }
 0x2e9   : > { %v1899_v2 = vmax.f32 %v1870_v14, 0.0 }
 0x2eb   : > { %v1911_v50 = vpack.c.bf16 %v1899_v2, %v1898_v19 }
 0x2ed   : > { %2021 = vmatmul.bf16.gmra.mxu3 %v1911_v50 }
 0x2ee   : > { %v1872_v61 = vpop.f32.mrf.mxu2 }
 0x2ef   : > { %v1873_v20 = vadd.f32 %v3785_v33, %v1872_v61 }
 0x2f1   : > { %v1900_v52 = vmax.f32 %v1873_v20, 0.0 }
 0x2f6   : > { %v1874_v21 = vpop.f32.mrf.mxu2 }
 0x2f7   : > { %v1875_v47 = vadd.f32 %v3785_v33, %v1874_v21 }
 0x2f9   : > { %v1901_v53 = vmax.f32 %v1875_v47, 0.0 }
 0x2fb   : > { %v1912_v3 = vpack.c.bf16 %v1901_v53, %v1900_v52 }
 0x2fd   : > { %2026 = vmatmul.bf16.gmra.mxu3 %v1912_v3 }
 0x2fe   : > { %v1877_v51 = vpop.f32.mrf.mxu2 }
 0x2ff   : > { %v1878_v54 = vadd.f32 %v3785_v33, %v1877_v51 }
 0x301   : > { %v1902_v57 = vmax.f32 %v1878_v54, 0.0 }
 0x306   : > { %v1879_v56 = vpop.f32.mrf.mxu2 }
 0x307   : > { %v1880_v31 = vadd.f32 %v3785_v33, %v1879_v56 }
 0x309   : > { %v1903_v34 = vmax.f32 %v1880_v31, 0.0 }
 0x30b   : > { %v1913_v12 = vpack.c.bf16 %v1903_v34, %v1902_v57 }
 0x30d   : > { %2031 = vmatmul.bf16.gmra.mxu3 %v1913_v12 }
 0x30e   : > { %v1882_v15 = vpop.f32.mrf.mxu2 }
 0x30f   : > { %v1883_v43 = vadd.f32 %v3785_v33, %v1882_v15 }
 0x310   : > { %v1992_v39 = vpop.f32.mrf.mxu3 }
 0x311   : > { %v1904_v16 = vmax.f32 %v1883_v43, 0.0  ;;  %v1993_v30 = vadd.f32 %v3809_v10, %v1992_v39 }
 0x313   : > { %v1914_v42 = vpack.c.bf16 %v1904_v16, %v1904_v16  ;;  %v2041_v38 = vmax.f32 %v1993_v30, 0.0 }
 0x316   : > { %v1884_v6 = vpop.f32.mrf.mxu2 }
 0x318   : > { %v1994_v60 = vpop.f32.mrf.mxu3 }
 0x319   : > { %v1995_v32 = vadd.f32 %v3809_v10, %v1994_v60 }
 0x31b   : > { %v2042_v46 = vmax.f32 %v1995_v32, 0.0 }
 0x31d   : > { %v2828_v33 = vpack.c.bf16 %v2042_v46, %v2041_v38  ;;  %2036 = vmatmul.bf16.gmra.mxu3 %v1914_v42 }
 0x31f   : > { %2829 = vst [vmem:[%s3817_s11] sm:$0xff] %v2828_v33  }
 0x320   : > { %v1997_v44 = vpop.f32.mrf.mxu3 }
 0x321   : > { %v1998_v55 = vadd.f32 %v3809_v10, %v1997_v44 }
 0x323   : > { %v2043_v36 = vmax.f32 %v1998_v55, 0.0 }
 0x328   : > { %v1999_v17 = vpop.f32.mrf.mxu3 }
 0x329   : > { %v2000_v48 = vadd.f32 %v3809_v10, %v1999_v17 }
 0x32b   : > { %v2044_v25 = vmax.f32 %v2000_v48, 0.0 }
 0x32d   : > { %v2833_v37 = vpack.c.bf16 %v2044_v25, %v2043_v36 }
 0x32f   : > { %2870 = vst [vmem:[%s3817_s11 + $0x8] sm:$0xff] %v2833_v37  }
 0x330   : > { %v2002_v41 = vpop.f32.mrf.mxu3 }
 0x331   : > { %v2003_v59 = vadd.f32 %v3809_v10, %v2002_v41 }
 0x333   : > { %v2045_v40 = vmax.f32 %v2003_v59, 0.0 }
 0x338   : > { %v2004_v63 = vpop.f32.mrf.mxu3 }
 0x339   : > { %v2005_v0 = vadd.f32 %v3809_v10, %v2004_v63 }
 0x33b   : > { %v2046_v26 = vmax.f32 %v2005_v0, 0.0 }
 0x33d   : > { %v2838_v35 = vpack.c.bf16 %v2046_v26, %v2045_v40 }
 0x33f   : > { %2871 = vst [vmem:[%s3817_s11 + $0x10] sm:$0xff] %v2838_v35  }
 0x340   : > { %v2007_v27 = vpop.f32.mrf.mxu3 }
 0x341   : > { %v2008_v22 = vadd.f32 %v3809_v10, %v2007_v27 }
 0x343   : > { %v2047_v4 = vmax.f32 %v2008_v22, 0.0 }
 0x348   : > { %v2009_v28 = vpop.f32.mrf.mxu3 }
 0x349   : > { %v2010_v58 = vadd.f32 %v3809_v10, %v2009_v28 }
 0x34b   : > { %v2048_v45 = vmax.f32 %v2010_v58, 0.0 }
 0x34d   : > { %v2843_v23 = vpack.c.bf16 %v2048_v45, %v2047_v4 }
 0x34f   : > { %2872 = vst [vmem:[%s3817_s11 + $0x18] sm:$0xff] %v2843_v23  }
 0x350   : > { %v2012_v24 = vpop.f32.mrf.mxu3 }
 0x351   : > { %v2013_v29 = vadd.f32 %v3809_v10, %v2012_v24 }
 0x353   : > { %v2049_v9 = vmax.f32 %v2013_v29, 0.0 }
 0x358   : > { %v2014_v5 = vpop.f32.mrf.mxu3 }
 0x359   : > { %v2015_v8 = vadd.f32 %v3809_v10, %v2014_v5 }
 0x35b   : > { %v2050_v18 = vmax.f32 %v2015_v8, 0.0 }
 0x35d   : > { %v2848_v11 = vpack.c.bf16 %v2050_v18, %v2049_v9 }
 0x35f   : > { %2873 = vst [vmem:[%s3817_s11 + $0x20] sm:$0xff] %v2848_v11  }
 0x360   : > { %v2017_v7 = vpop.f32.mrf.mxu3 }
 0x361   : > { %v2018_v13 = vadd.f32 %v3809_v10, %v2017_v7 }
 0x363   : > { %v2051_v1 = vmax.f32 %v2018_v13, 0.0 }
 0x368   : > { %v2019_v62 = vpop.f32.mrf.mxu3 }
 0x369   : > { %v2020_v49 = vadd.f32 %v3809_v10, %v2019_v62 }
 0x36b   : > { %v2052_v14 = vmax.f32 %v2020_v49, 0.0 }
 0x36d   : > { %v2853_v19 = vpack.c.bf16 %v2052_v14, %v2051_v1 }
 0x36f   : > { %2874 = vst [vmem:[%s3817_s11 + $0x28] sm:$0xff] %v2853_v19  }
 0x370   : > { %v2022_v2 = vpop.f32.mrf.mxu3 }
 0x371   : > { %v2023_v50 = vadd.f32 %v3809_v10, %v2022_v2 }
 0x373   : > { %v2053_v21 = vmax.f32 %v2023_v50, 0.0 }
 0x378   : > { %v2024_v61 = vpop.f32.mrf.mxu3 }
 0x379   : > { %v2025_v20 = vadd.f32 %v3809_v10, %v2024_v61 }
 0x37b   : > { %v2054_v47 = vmax.f32 %v2025_v20, 0.0 }
 0x37d   : > { %v2858_v52 = vpack.c.bf16 %v2054_v47, %v2053_v21 }
 0x37f   : > { %2875 = vst [vmem:[%s3817_s11 + $0x30] sm:$0xff] %v2858_v52  }
 0x380   : > { %v2027_v53 = vpop.f32.mrf.mxu3 }
 0x381   : > { %v2028_v3 = vadd.f32 %v3809_v10, %v2027_v53 }
 0x383   : > { %v2055_v56 = vmax.f32 %v2028_v3, 0.0 }
 0x388   : > { %v2029_v51 = vpop.f32.mrf.mxu3 }
 0x389   : > { %v2030_v54 = vadd.f32 %v3809_v10, %v2029_v51 }
 0x38b   : > { %v2056_v31 = vmax.f32 %v2030_v54, 0.0 }
 0x38d   : > { %v2863_v57 = vpack.c.bf16 %v2056_v31, %v2055_v56 }
 0x38f   : > { %2876 = vst [vmem:[%s3817_s11 + $0x38] sm:$0xff] %v2863_v57  }
 0x390   : > { %v2032_v34 = vpop.f32.mrf.mxu3 }
 0x391   : > { %v2033_v12 = vadd.f32 %v3809_v10, %v2032_v34 }
 0x393   : > { %v2057_v43 = vmax.f32 %v2033_v12, 0.0 }
 0x398   : > { %v2034_v15 = vpop.f32.mrf.mxu3 }
 0x399   : > { %v2035_v39 = vadd.f32 %v3809_v10, %v2034_v15 }
 0x39b   : > { %v2058_v6 = vmax.f32 %v2035_v39, 0.0 }
 0x39d   : > { %v2868_v16 = vpack.c.bf16 %v2058_v6, %v2057_v43 }
 0x39f   : > { %2877 = vst [vmem:[%s3817_s11 + $0x40] sm:$0xff] %v2868_v16  }
 0x3a0   : > { %v2037_v30 = vpop.f32.mrf.mxu3 }
 0x3a1   : > { %v2038_v60 = vadd.f32 %v3809_v10, %v2037_v30 }
 0x3a3   : > { %v2059_v32 = vmax.f32 %v2038_v60, 0.0 }
 0x3a5   : > { %v2078_v42 = vpack.c.bf16 %v2059_v32, %v2059_v32 }
 0x3a7   : > { %2097 = vst [vmem:[%s3817_s11 + $0x48] sm:$0xf] %v2078_v42 }
 0x3a8   : > { %v2039_v38 = vpop.f32.mrf.mxu3 }
 0x3a9 PF: > { %s19_s30 = sadd.s32 1, %s2895_s30  }
 0x3aa   : > { %p16_p4 = scmp.ge.s32.totalorder %s19_s30, 4  }
 0x3ac   :  { %18 = sbr.rel (!%p16_p4) target bundleno = 1 (0x1), region = 86 }

</bundles_post_ra>
